<compile_context>
chip_gen: v7x
topology: tpu7x:2x2x1
jax: 0.10.0
libtpu: 0.0.40
codegen_flags: <defaults>
</compile_context>

<pallas_src>
import functools

import jax
import jax.numpy as jnp
from jax import lax
from jax.experimental import pallas as pl
from jax.experimental.pallas import tpu as pltpu

# ----------------------------- model constants ------------------------------
DIM = 256            # ViT1D token dim / CPC inp_dim
HID = 256            # CPCMinion n_hidden
STEPS_PREDICTED = 5
N_FALSE_NEG = 9
K_CAND = 1 + N_FALSE_NEG


def _pick_tile(n, target):
    """Largest divisor of n that is <= target (n itself if n <= target)."""
    if n <= target:
        return n
    best = 1
    for d in range(1, target + 1):
        if n % d == 0:
            best = d
    return best


# ------------------- hoisted input projection (big matmul) -------------------
def _matmul_bias_kernel(x_ref, w_ref, b_ref, o_ref):
    acc = jnp.dot(x_ref[...], w_ref[...],
                  preferred_element_type=jnp.float32) + b_ref[...]
    o_ref[...] = acc.astype(o_ref.dtype)


def matmul_bias(x, w, b, *, out_dtype=jnp.bfloat16, row_tile=256):
    """x: (rows, d_in) bf16, w: (d_in, d_out) bf16, b: (1, d_out) f32."""
    rows, d_in = x.shape
    d_out = w.shape[1]
    tr = _pick_tile(rows, row_tile)
    return pl.pallas_call(
        _matmul_bias_kernel,
        out_shape=jax.ShapeDtypeStruct((rows, d_out), out_dtype),
        grid=(rows // tr,),
        in_specs=[
            pl.BlockSpec((tr, d_in), lambda i: (i, 0)),
            pl.BlockSpec((d_in, d_out), lambda i: (0, 0)),
            pl.BlockSpec((1, d_out), lambda i: (0, 0)),
        ],
        out_specs=pl.BlockSpec((tr, d_out), lambda i: (i, 0)),
        compiler_params=pltpu.CompilerParams(
            dimension_semantics=("parallel",)),
    )(x, w, b)


# ---------------- 2-layer LSTM recurrence (chunked over time) ----------------
def _lstm_kernel(gih_ref, whh0_ref, wcat1_ref, b1_ref, out_ref,
                 h0_ref, c0_ref, h1_ref, c1_ref, *, unroll):
    """One grid step = CHUNK timesteps of the 2-layer LSTM for one batch block."""
    H = h0_ref.shape[-1]
    Bt = h0_ref.shape[0]
    chunk = gih_ref.shape[0]

    @pl.when(pl.program_id(1) == 0)            # new batch block -> reset state
    def _():
        h0_ref[...] = jnp.zeros_like(h0_ref)
        c0_ref[...] = jnp.zeros_like(c0_ref)
        h1_ref[...] = jnp.zeros_like(h1_ref)
        c1_ref[...] = jnp.zeros_like(c1_ref)

    whh0 = whh0_ref[...]                       # (H, 4H)  layer-0 recurrent
    wcat1 = wcat1_ref[...]                     # (2H, 4H) layer-1 [W_ih; W_hh]
    b1 = jnp.broadcast_to(b1_ref[...], (Bt, 4 * H))   # hoisted out of the loop

    def gate_split(g):
        # PyTorch gate order: i, f, g, o -- nonlinearities kept in f32.
        return (jax.nn.sigmoid(g[:, 0 * H:1 * H]),
                jax.nn.sigmoid(g[:, 1 * H:2 * H]),
                jnp.tanh(g[:, 2 * H:3 * H]),
                jax.nn.sigmoid(g[:, 3 * H:4 * H]))

    def step(t, carry):
        h0, c0, h1, c1 = carry
        # layer 0: input projection precomputed; only recurrent matmul in loop
        g0 = gih_ref[t].astype(jnp.float32) + jnp.dot(
            h0.astype(jnp.bfloat16), whh0, preferred_element_type=jnp.float32)
        i0, f0, gg0, o0 = gate_split(g0)
        c0 = f0 * c0 + i0 * gg0
        h0 = o0 * jnp.tanh(c0)
        # layer 1: single merged matmul on concat([h0, h1])
        x1 = jnp.concatenate(
            [h0.astype(jnp.bfloat16), h1.astype(jnp.bfloat16)], axis=1)
        g1 = jnp.dot(x1, wcat1, preferred_element_type=jnp.float32) + b1
        i1, f1, gg1, o1 = gate_split(g1)
        c1 = f1 * c1 + i1 * gg1
        h1 = o1 * jnp.tanh(c1)
        out_ref[t] = h1.astype(out_ref.dtype)
        return (h0, c0, h1, c1)

    carry = (h0_ref[...], c0_ref[...], h1_ref[...], c1_ref[...])
    carry = lax.fori_loop(0, chunk, step, carry, unroll=unroll)
    h0_ref[...] = carry[0]
    c0_ref[...] = carry[1]
    h1_ref[...] = carry[2]
    c1_ref[...] = carry[3]


def lstm_rnn(gih0, params, *, max_chunk=32, unroll=8):
    """gih0: (S, B_pad, 4H) bf16 precomputed layer-0 gates -> h1 (S, B_pad, H)."""
    S, Bp, G4 = gih0.shape
    H = params["whh0"].shape[0]
    chunk = _pick_tile(S, max_chunk)
    n_bblk = 2 if Bp >= 32 else 1              # v7x: split batch across 2 TCs
    tb = Bp // n_bblk
    return pl.pallas_call(
        functools.partial(_lstm_kernel, unroll=min(unroll, chunk)),
        out_shape=jax.ShapeDtypeStruct((S, Bp, H), jnp.bfloat16),
        grid=(n_bblk, S // chunk),
        in_specs=[
            pl.BlockSpec((chunk, tb, G4), lambda b, s: (s, b, 0)),  # input gates
            pl.BlockSpec((H, G4), lambda b, s: (0, 0)),             # W_hh layer 0
            pl.BlockSpec((2 * H, G4), lambda b, s: (0, 0)),         # [W_ih1;W_hh1]
            pl.BlockSpec((1, G4), lambda b, s: (0, 0)),             # bias layer 1
        ],
        out_specs=pl.BlockSpec((chunk, tb, H), lambda b, s: (s, b, 0)),
        scratch_shapes=[pltpu.VMEM((tb, H), jnp.float32)] * 4,      # h0 c0 h1 c1
        compiler_params=pltpu.CompilerParams(
            dimension_semantics=("parallel", "arbitrary")),
    )(gih0, params["whh0"], params["wcat1"], params["b1"])


# ------ fused: projection + candidate gather + CPC scores + masked CE --------
def _cpc_loss_kernel(idx_ref, h1_ref, wp_ref, hflat_ref, mask_ref, loss_ref,
                     cand_ref, *, k_cand, inv_bs):
    tn = h1_ref.shape[0]

    @pl.when(pl.program_id(0) == 0)
    def _():
        loss_ref[0, 0] = jnp.float32(0.0)

    # context = proj(h1)  (Linear, no bias) on the MXU
    ctx = jnp.dot(h1_ref[...], wp_ref[...], preferred_element_type=jnp.float32)

    # gather the K candidate rows per context row from the VMEM-resident table
    row0 = pl.program_id(0) * tn

    def gather(n, carry):
        base = (row0 + n) * k_cand
        for k in range(k_cand):                           # static unroll over K
            r = idx_ref[base + k]
            cand_ref[k, pl.ds(n, 1), :] = hflat_ref[pl.ds(r, 1), :]
        return carry

    lax.fori_loop(0, tn, gather, 0, unroll=2)

    # scores[n, k] = ctx[n] . cand[k, n]   (VPU multiply + lane reduce)
    scores = [jnp.sum(ctx * cand_ref[k].astype(jnp.float32),
                      axis=-1, keepdims=True) for k in range(k_cand)]

    # masked cross-entropy with target class 0 (positive); no lane concat needed
    m = scores[0]
    for k in range(1, k_cand):
        m = jnp.maximum(m, scores[k])
    se = jnp.zeros_like(m)
    for k in range(k_cand):
        se = se + jnp.exp(scores[k] - m)
    ce = (jnp.log(se) + m - scores[0]) * mask_ref[...]
    loss_ref[0, 0] += jnp.sum(ce) * inv_bs


def cpc_fused_loss(h1_sel, wproj, h_flat, cand_idx, mask, bs, *, row_tile=128):
    """h1_sel: (N,H) bf16, wproj: (H,D) bf16, h_flat: (M,D) bf16,
    cand_idx: (N*K,) int32 flat rows into h_flat, mask: (N,1) f32 -> scalar."""
    N, H = h1_sel.shape
    D = wproj.shape[1]
    M = h_flat.shape[0]
    K = cand_idx.shape[0] // N
    tn = _pick_tile(N, row_tile)
    loss = pl.pallas_call(
        functools.partial(_cpc_loss_kernel, k_cand=K, inv_bs=1.0 / float(bs)),
        out_shape=jax.ShapeDtypeStruct((1, 1), jnp.float32),
        grid_spec=pltpu.PrefetchScalarGridSpec(
            num_scalar_prefetch=1,                         # cand_idx -> SMEM
            grid=(N // tn,),
            in_specs=[
                pl.BlockSpec((tn, H), lambda i, idx: (i, 0)),   # h1 rows
                pl.BlockSpec((H, D), lambda i, idx: (0, 0)),    # proj weight
                pl.BlockSpec((M, D), lambda i, idx: (0, 0)),    # candidate table
                pl.BlockSpec((tn, 1), lambda i, idx: (i, 0)),   # row mask
            ],
            out_specs=pl.BlockSpec(memory_space=pltpu.SMEM),
            scratch_shapes=[pltpu.VMEM((K, tn, D), jnp.bfloat16)]),
        compiler_params=pltpu.CompilerParams(
            dimension_semantics=("arbitrary",)),           # running scalar sum
    )(cand_idx, h1_sel, wproj, h_flat, mask)
    return loss[0, 0]


# ----------------- negative-sampling index construction (glue) ---------------
def build_candidate_indices(key, bs, seq, b_pad, steps_predicted=STEPS_PREDICTED,
                            n_false_negatives=N_FALSE_NEG):
    """Vectorised replica of CPCMinion.cpc_loss candidate indices (no T loop).

    Returns flat indices into h_flat (row b*seq + s), shape (T*b_pad*K,), plus a
    (T*b_pad, 1) mask zeroing padded batch rows.  Row order is time-major
    (n = t*b_pad + b) to match the LSTM output layout."""
    T = seq - steps_predicted
    K = 1 + n_false_negatives
    i_col = jnp.arange(T, dtype=jnp.int32)[:, None]                       # (T,1)
    idxs = jax.random.randint(key, (T, bs * n_false_negatives), 0,
                              bs * (seq - 1), dtype=jnp.int32)
    idxs_seq = jnp.remainder(idxs, seq - 1)
    idxs_seq2 = jnp.where(idxs_seq < i_col + steps_predicted,
                          idxs_seq, idxs_seq + 1)                # skip positive
    idxs_batch = idxs // (seq - 1)
    neg_flat = (idxs_batch * seq + idxs_seq2).reshape(T, bs, n_false_negatives)
    pos_flat = (jnp.arange(bs, dtype=jnp.int32)[None, :] * seq
                + (i_col + steps_predicted))                              # (T,bs)
    cand = jnp.concatenate([pos_flat[..., None], neg_flat], axis=-1)      # (T,bs,K)
    cand = jnp.pad(cand, ((0, 0), (0, b_pad - bs), (0, 0)))     # padded rows -> 0
    mask = jnp.zeros((T, b_pad), jnp.float32).at[:, :bs].set(1.0)
    return (cand.reshape(T * b_pad * K).astype(jnp.int32),
            mask.reshape(T * b_pad, 1))


# ------------------------------ parameter init -------------------------------
def init_params(key, dim=DIM, hid=HID):
    """Synthetic init matching PyTorch LSTM/Linear shapes; weights stored
    pre-transposed for x @ W and cast to bf16 (MXU-native), biases kept f32.
    Layer-1's W_ih and W_hh are concatenated into a single (2H, 4H) matrix."""
    s = 1.0 / jnp.sqrt(jnp.float32(hid))
    ks = jax.random.split(key, 7)
    u = lambda k, shape: jax.random.uniform(k, shape, jnp.float32, -s, s)
    wih1 = u(ks[3], (hid, 4 * hid))
    whh1 = u(ks[4], (hid, 4 * hid))
    return {
        "wih0": u(ks[0], (dim, 4 * hid)).astype(jnp.bfloat16),   # layer-0 W_ih^T
        "whh0": u(ks[1], (hid, 4 * hid)).astype(jnp.bfloat16),   # layer-0 W_hh^T
        "b0":   u(ks[2], (1, 4 * hid)),                          # b_ih + b_hh
        "wcat1": jnp.concatenate([wih1, whh1], 0).astype(jnp.bfloat16),
        "b1":   u(ks[5], (1, 4 * hid)),
        "wproj": u(ks[6], (hid, dim)).astype(jnp.bfloat16),      # proj weight^T
    }


# ------------------------------- forward pass --------------------------------
def cpc_pretrain_forward(h, params, neg_key):
    """cpcPretrainModel.forward: encoded tokens h (B, seq, dim) -> scalar CPC loss."""
    B, S, D = h.shape
    H = params["whh0"].shape[0]
    T = S - STEPS_PREDICTED
    B_pad = max(16, -(-B // 16) * 16)          # bf16 sublane-aligned batch

    h_bf = jnp.pad(h.astype(jnp.bfloat16), ((0, B_pad - B), (0, 0), (0, 0)))
    h_flat = h_bf.reshape(B_pad * S, D)        # candidate table, batch-major
    # TODO(synk): fold this bf16 time-major transpose into the projection kernel
    #             (batch-major LSTM would need dynamic middle-dim slicing).
    x_tm = jnp.transpose(h_bf, (1, 0, 2))      # (S, B_pad, D)

    # 1) hoisted layer-0 input projection for ALL timesteps (bf16 pre-activations)
    gih0 = matmul_bias(x_tm.reshape(S * B_pad, D), params["wih0"],
                       params["b0"]).reshape(S, B_pad, 4 * H)

    # 2) serial 2-layer LSTM recurrence (merged layer-1 matmul, chunked time)
    h1_seq = lstm_rnn(gih0, params)            # (S, B_pad, H) bf16

    # 3) fused proj + candidate gather + CPC scores + masked cross-entropy:
    #    no score matrix and no (T,B,K,D) candidate tensor ever hit HBM.
    h1_sel = h1_seq[:T].reshape(T * B_pad, H)
    cand_idx, mask = build_candidate_indices(neg_key, B, S, B_pad)
    return cpc_fused_loss(h1_sel, params["wproj"], h_flat, cand_idx, mask, B)


# ------------------------------------ main -----------------------------------
if __name__ == "__main__":
    key = jax.random.PRNGKey(0)
    k_h, k_p, k_neg = jax.random.split(key, 3)

    B, SEQ = 2, 16                                         # small test shapes
    h = jax.random.normal(k_h, (B, SEQ, DIM), jnp.float32)  # ViT1D-encoded tokens
    params = init_params(k_p)

    loss = cpc_pretrain_forward(h, params, k_neg)
    loss = jax.block_until_ready(loss)

    assert loss.shape == () and bool(jnp.isfinite(loss)), loss
    print("KERNEL_OK")
</pallas_src>

<mosaic_0001>
module attributes {stable_mosaic.version = 11 : i64} {
  func.func @_matmul_bias_kernel(%arg0: i32, %arg1: memref<256x256xbf16, #tpu.memory_space<vmem>>, %arg2: memref<256x1024xbf16, #tpu.memory_space<vmem>>, %arg3: memref<1x1024xf32, #tpu.memory_space<vmem>>, %arg4: memref<256x1024xbf16, #tpu.memory_space<vmem>>) attributes {dimension_semantics = [#tpu.dimension_semantics<parallel>], iteration_bounds = array<i64: 1>, scalar_prefetch = 0 : i64, scratch_operands = 0 : i64, tpu.core_type = #tpu.core_type<tc>, window_params = [{transform_indices = @transform_0, window_bounds = array<i64: 256, 256>}, {pipeline_mode = #tpu.pipeline_mode<synchronous>, transform_indices = @transform_1, window_bounds = array<i64: 256, 1024>}, {pipeline_mode = #tpu.pipeline_mode<synchronous>, transform_indices = @transform_2, window_bounds = array<i64: 1, 1024>}, {transform_indices = @transform_3, window_bounds = array<i64: 256, 1024>}]} {
    %c0 = arith.constant 0 : index
    %c0_0 = arith.constant 0 : index
    %0 = vector.load %arg1[%c0, %c0_0] : memref<256x256xbf16, #tpu.memory_space<vmem>>, vector<256x256xbf16>
    %c0_1 = arith.constant 0 : index
    %c0_2 = arith.constant 0 : index
    %1 = vector.load %arg2[%c0_1, %c0_2] : memref<256x1024xbf16, #tpu.memory_space<vmem>>, vector<256x1024xbf16>
    %cst = arith.constant dense<0.000000e+00> : vector<256x1024xf32>
    %2 = tpu.matmul %0, %1, %cst {dimension_numbers = #tpu.dot_dimension_numbers<[1], [0], [0], [1], [0, 0, 1, 1], [], []>} : vector<256x256xbf16>, vector<256x1024xbf16>, vector<256x1024xf32> -> vector<256x1024xf32>
    %c0_3 = arith.constant 0 : index
    %c0_4 = arith.constant 0 : index
    %3 = vector.load %arg3[%c0_3, %c0_4] : memref<1x1024xf32, #tpu.memory_space<vmem>>, vector<1x1024xf32>
    %4 = vector.broadcast %3 : vector<1x1024xf32> to vector<256x1024xf32>
    %5 = arith.addf %2, %4 : vector<256x1024xf32>
    %6 = arith.truncf %5 : vector<256x1024xf32> to vector<256x1024xbf16>
    %c0_5 = arith.constant 0 : index
    %c0_6 = arith.constant 0 : index
    %7 = vector.load %arg4[%c0_5, %c0_6] : memref<256x1024xbf16, #tpu.memory_space<vmem>>, vector<256x1024xbf16>
    tpu.vector_store %arg4[%c0_5, %c0_6], %6 {strides = array<i32>} : memref<256x1024xbf16, #tpu.memory_space<vmem>>, vector<256x1024xbf16>,
    return
  }
  func.func @transform_0(%arg0: i32) -> (i32, i32) {
    %c0_i32 = arith.constant 0 : i32
    %c0_i32_0 = arith.constant 0 : i32
    return %arg0, %c0_i32 : i32, i32
  }
  func.func @transform_1(%arg0: i32) -> (i32, i32) {
    %c0_i32 = arith.constant 0 : i32
    %c0_i32_0 = arith.constant 0 : i32
    %c0_i32_1 = arith.constant 0 : i32
    return %c0_i32, %c0_i32_0 : i32, i32
  }
  func.func @transform_2(%arg0: i32) -> (i32, i32) {
    %c0_i32 = arith.constant 0 : i32
    %c0_i32_0 = arith.constant 0 : i32
    %c0_i32_1 = arith.constant 0 : i32
    return %c0_i32, %c0_i32_0 : i32, i32
  }
  func.func @transform_3(%arg0: i32) -> (i32, i32) {
    %c0_i32 = arith.constant 0 : i32
    %c0_i32_0 = arith.constant 0 : i32
    return %arg0, %c0_i32 : i32, i32
  }
}

</mosaic_0001>

<bundles_post_ra>
// kernel: tpu_custom_call.1
= control target key start
LH: loop header
LB: loop body
LE: loop exit
PB: predicated region body
PF: predicated region fallthrough
CT: control target
= control target key end

     0   :  { %8 = vsyncpa [#allocation3], 0  ;;  %s3874_s0 = inlined_call_operand.hbm [shape: bf16[256,256], index: 0, kind: input, shape index: {}]   ;;  %s3875_s1 = inlined_call_operand.hbm [shape: bf16[256,1024], index: 1, kind: input, shape index: {}]   ;;  %s3876_s2 = inlined_call_operand.hbm [shape: f32[1,1024], index: 2, kind: input, shape index: {}]   ;;  %s3877_s3 = inlined_call_operand.hbm [shape: bf16[256,1024], index: 3, kind: output, shape index: {}]  }
   0x1   :  { %9 = vsyncpa [#allocation6], 0 }
   0x2   :  { %10 = vsyncpa [#allocation4], 0  ;;  %s3308_s12 = smov [#allocation5]   ;;  %s3214_s16 = scalar_lea.hbm %s3875_s1, 16384 }
   0x3   :  { %s28_s13 = sshll.u32 %s3308_s12, 4  ;;  %p3215_p0 = scmp.ne.s32.totalorder %s3875_s1, %s3214_s16  ;;  %s29_s13 = int_to_ptr.vmem [resolvable:$true] %s28_s13 }
   0x4   :  { %p3218_p1 = scmp.lt.u32.totalorder %s3214_s16, %s3875_s1 }
   0x6   :  { %p3220_p2 = pnand %p3218_p1, %p3215_p0 }
   0x8   :  { %3223 = shalt.err (!%p3220_p2)
}
   0x9   :  { %s3224_s21 = scalar_lea.vmem %s29_s13, 16384  ;;  %p3229_p4 = scmp.lt.s32.totalorder %s29_s13, %s29_s13 }
   0xa   :  { %p3225_p3 = scmp.ne.s32.totalorder %s29_s13, %s3224_s21  ;;  %p3230_p5 = scmp.lt.s32.totalorder %s3224_s21, %s3224_s21 }
   0xc   :  { %p3231_p6 = por %p3230_p5, %p3229_p4 }
   0xe   :  { %p3232_p7 = pnand %p3231_p6, %p3225_p3 }
  0x10   :  { %3235 = shalt.err (!%p3232_p7)
}
  0x11   :  { %s3309_s22 = smov 512   ;;  %s3310_s23 = smov 32  }
  0x12   :  { %34 = dma.hbm_to_vmem [thread:$0]  %s3875_s1, 16384, %s29_s13, [#allocation6], %s3309_s22, %s3309_s22, %s3310_s23  }
  0x13   :  { %s3311_s26 = smov [#allocation2]   ;;  %s3236_s30 = scalar_lea.hbm %s3874_s0, 4096 }
  0x14   :  { %s16_s27 = sshll.u32 %s3311_s26, 4  ;;  %p3237_p8 = scmp.ne.s32.totalorder %s3874_s0, %s3236_s30  ;;  %s17_s27 = int_to_ptr.vmem [resolvable:$true] %s16_s27 }
  0x15   :  { %p3240_p9 = scmp.lt.u32.totalorder %s3236_s30, %s3874_s0 }
  0x17   :  { %p3242_p10 = pnand %p3240_p9, %p3237_p8 }
  0x19   :  { %3245 = shalt.err (!%p3242_p10)
}
  0x1a   :  { %s3246_s8 = scalar_lea.vmem %s17_s27, 4096  ;;  %p3251_p12 = scmp.lt.s32.totalorder %s17_s27, %s17_s27 }
  0x1b   :  { %p3247_p11 = scmp.ne.s32.totalorder %s17_s27, %s3246_s8  ;;  %p3252_p13 = scmp.lt.s32.totalorder %s3246_s8, %s3246_s8 }
  0x1d   :  { %p3253_p0 = por %p3252_p13, %p3251_p12 }
  0x1f   :  { %p3254_p1 = pnand %p3253_p0, %p3247_p11 }
  0x21   :  { %3257 = shalt.err (!%p3254_p1)
}
  0x22   :  { %s3312_s1 = smov 128   ;;  %s3313_s9 = smov 8  }
  0x23   :  { %22 = dma.hbm_to_vmem [thread:$0]  %s3874_s0, 4096, %s17_s27, [#allocation3], %s3312_s1, %s3312_s1, %s3313_s9  }
  0x24   :  { %s3314_s12 = smov [#allocation7]   ;;  %s3258_s16 = scalar_lea.hbm %s3876_s2, 128 }
  0x25   :  { %s41_s13 = sshll.u32 %s3314_s12, 4  ;;  %p3259_p2 = scmp.ne.s32.totalorder %s3876_s2, %s3258_s16  ;;  %s42_s13 = int_to_ptr.vmem [resolvable:$true] %s41_s13 }
  0x26   :  { %p3262_p3 = scmp.lt.u32.totalorder %s3258_s16, %s3876_s2 }
  0x28   :  { %p3264_p4 = pnand %p3262_p3, %p3259_p2 }
  0x2a   :  { %3267 = shalt.err (!%p3264_p4)
}
  0x2b   :  { %s3268_s21 = scalar_lea.vmem %s42_s13, 128  ;;  %p3273_p6 = scmp.lt.s32.totalorder %s42_s13, %s42_s13 }
  0x2c   :  { %p3269_p5 = scmp.ne.s32.totalorder %s42_s13, %s3268_s21  ;;  %p3274_p7 = scmp.lt.s32.totalorder %s3268_s21, %s3268_s21 }
  0x2e   :  { %p3275_p8 = por %p3274_p7, %p3273_p6 }
  0x30   :  { %p3276_p9 = pnand %p3275_p8, %p3269_p5 }
  0x32   :  { %3279 = shalt.err (!%p3276_p9)
}
  0x33   :  { %44 = dma.hbm_to_vmem [thread:$0]  %s3876_s2, 128, %s42_s13, [#allocation6]  }
  0x34   :  { %3302 = dma.done.wait [#allocation3], 4096  }
  0x35   :  { %3303 = vsyncadd [#allocation3], 4294963200 }
  0x36   :  { %3304 = dma.done.wait [#allocation6], 16512  }
  0x37   :  { %3305 = vsyncadd [#allocation6], 4294950784  ;;  %v86_v0 = vld [vmem:[#allocation5] sm:$0xff]  ;;  %v87_v2 = vld [vmem:[#allocation5 + $0x8] sm:$0xff]  ;;  %s3315_s2 = smov [#allocation8]  }
  0x38   :  { %v90_v1 = vld [vmem:[#allocation5 + $0x20] sm:$0xff]  ;;  %v91_v4 = vld [vmem:[#allocation5 + $0x28] sm:$0xff]  ;;  %s2729_s25 = sshll.u32 %s3315_s2, 4  ;;  %s2730_s25 = int_to_ptr.vmem [resolvable:$true] %s2729_s25 }
  0x39   :  { %v2775_v3 = vcombine.high %v86_v0, %v90_v1  ;;  %v2774_v5 = vcombine.low %v86_v0, %v90_v1  ;;  %v94_v6 = vld [vmem:[#allocation5 + $0x40] sm:$0xff]  ;;  %v2777_v8 = vcombine.high %v87_v2, %v91_v4  ;;  %v2776_v9 = vcombine.low %v87_v2, %v91_v4  ;;  %v95_v11 = vld [vmem:[#allocation5 + $0x48] sm:$0xff]  ;;  %s3280_s26 = scalar_lea.vmem %s2730_s25, 16384  ;;  %p3285_p11 = scmp.lt.s32.totalorder %s2730_s25, %s2730_s25 }
  0x3a   :  { %v98_v7 = vld [vmem:[#allocation5 + $0x60] sm:$0xff]  ;;  %v99_v12 = vld [vmem:[#allocation5 + $0x68] sm:$0xff]  ;;  %p3281_p10 = scmp.ne.s32.totalorder %s2730_s25, %s3280_s26  ;;  %p3286_p12 = scmp.lt.s32.totalorder %s3280_s26, %s3280_s26 }
  0x3b   :  { %v2783_v10 = vcombine.high %v94_v6, %v98_v7  ;;  %v102_v13 = vld [vmem:[#allocation5 + $0x80] sm:$0xff]  ;;  %1056 = vmatprep.subr.bf16.mxu0 %v2775_v3  ;;  %v2785_v14 = vcombine.high %v95_v11, %v99_v12  ;;  %v103_v16 = vld [vmem:[#allocation5 + $0x88] sm:$0xff]  ;;  %1249 = vmatprep.subr.bf16.mxu1 %v2777_v8  ;;  %v2782_v18 = vcombine.low %v94_v6, %v98_v7 }
  0x3c   :  { %v106_v15 = vld [vmem:[#allocation5 + $0xa0] sm:$0xff]  ;;  %v107_v17 = vld [vmem:[#allocation5 + $0xa8] sm:$0xff]  ;;  %1057 = vmatpush1.bf16.msra.mxu0 %v2774_v5  ;;  %1250 = vmatpush1.bf16.msra.mxu1 %v2776_v9  ;;  %v2784_v19 = vcombine.low %v95_v11, %v99_v12  ;;  %p3287_p13 = por %p3286_p12, %p3285_p11 }
  0x3d   :  { %1058 = vmatprep.subr.bf16.mxu0 %v2783_v10  ;;  %v2791_v20 = vcombine.high %v102_v13, %v106_v15  ;;  %1251 = vmatprep.subr.bf16.mxu1 %v2785_v14  ;;  %v2793_v21 = vcombine.high %v103_v16, %v107_v17  ;;  %v110_v22 = vld [vmem:[#allocation5 + $0xc0] sm:$0xff]  ;;  %v111_v24 = vld [vmem:[#allocation5 + $0xc8] sm:$0xff]  ;;  %v2790_v26 = vcombine.low %v102_v13, %v106_v15 }
  0x3e   :  { %v114_v23 = vld [vmem:[#allocation5 + $0xe0] sm:$0xff]  ;;  %v115_v25 = vld [vmem:[#allocation5 + $0xe8] sm:$0xff]  ;;  %v2792_v27 = vcombine.low %v103_v16, %v107_v17  ;;  %p3288_p0 = pnand %p3287_p13, %p3281_p10 }
  0x3f   :  { %v2799_v28 = vcombine.high %v110_v22, %v114_v23  ;;  %v2801_v29 = vcombine.high %v111_v24, %v115_v25  ;;  %v118_v30 = vld [vmem:[#allocation5 + $0x100] sm:$0xff]  ;;  %v119_v32 = vld [vmem:[#allocation5 + $0x108] sm:$0xff]  ;;  %v2798_v34 = vcombine.low %v110_v22, %v114_v23  ;;  %v2800_v35 = vcombine.low %v111_v24, %v115_v25 }
  0x40   :  { %1059 = vmatpush1.bf16.msra.mxu0 %v2782_v18  ;;  %1252 = vmatpush1.bf16.msra.mxu1 %v2784_v19  ;;  %v122_v31 = vld [vmem:[#allocation5 + $0x120] sm:$0xff]  ;;  %v123_v33 = vld [vmem:[#allocation5 + $0x128] sm:$0xff] }
  0x41   :  { %1060 = vmatprep.subr.bf16.mxu0 %v2791_v20  ;;  %1253 = vmatprep.subr.bf16.mxu1 %v2793_v21  ;;  %v2807_v36 = vcombine.high %v118_v30, %v122_v31  ;;  %v2809_v37 = vcombine.high %v119_v32, %v123_v33  ;;  %v126_v38 = vld [vmem:[#allocation5 + $0x140] sm:$0xff]  ;;  %v127_v40 = vld [vmem:[#allocation5 + $0x148] sm:$0xff]  ;;  %v2806_v42 = vcombine.low %v118_v30, %v122_v31 }
  0x42   :  { %v130_v39 = vld [vmem:[#allocation5 + $0x160] sm:$0xff]  ;;  %v131_v41 = vld [vmem:[#allocation5 + $0x168] sm:$0xff]  ;;  %v2808_v43 = vcombine.low %v119_v32, %v123_v33 }
  0x43   :  { %v2815_v44 = vcombine.high %v126_v38, %v130_v39  ;;  %v2817_v45 = vcombine.high %v127_v40, %v131_v41  ;;  %v134_v46 = vld [vmem:[#allocation5 + $0x180] sm:$0xff]  ;;  %v135_v48 = vld [vmem:[#allocation5 + $0x188] sm:$0xff]  ;;  %v2814_v50 = vcombine.low %v126_v38, %v130_v39  ;;  %v2816_v51 = vcombine.low %v127_v40, %v131_v41 }
  0x44   :  { %1061 = vmatpush1.bf16.msra.mxu0 %v2790_v26  ;;  %1254 = vmatpush1.bf16.msra.mxu1 %v2792_v27  ;;  %v138_v47 = vld [vmem:[#allocation5 + $0x1a0] sm:$0xff]  ;;  %v139_v49 = vld [vmem:[#allocation5 + $0x1a8] sm:$0xff] }
  0x45   :  { %1062 = vmatprep.subr.bf16.mxu0 %v2799_v28  ;;  %1255 = vmatprep.subr.bf16.mxu1 %v2801_v29  ;;  %v2823_v52 = vcombine.high %v134_v46, %v138_v47  ;;  %v2825_v53 = vcombine.high %v135_v48, %v139_v49  ;;  %v142_v54 = vld [vmem:[#allocation5 + $0x1c0] sm:$0xff]  ;;  %v143_v57 = vld [vmem:[#allocation5 + $0x1c8] sm:$0xff]  ;;  %v2822_v59 = vcombine.low %v134_v46, %v138_v47 }
  0x46   :  { %v146_v55 = vld [vmem:[#allocation5 + $0x1e0] sm:$0xff]  ;;  %v147_v58 = vld [vmem:[#allocation5 + $0x1e8] sm:$0xff]  ;;  %v2824_v60 = vcombine.low %v135_v48, %v139_v49 }
  0x47   :  { %v3375_v56 = vld [vmem:[#allocation2 + $0x4] ss:$8 sps:$4 sm:$0xff]   ;;  %v2831_v61 = vcombine.high %v142_v54, %v146_v55  ;;  %v2833_v62 = vcombine.high %v143_v57, %v147_v58  ;;  %v2830_v3 = vcombine.low %v142_v54, %v146_v55  ;;  %v2832_v4 = vcombine.low %v143_v57, %v147_v58 }
  0x48   :  { %1063 = vmatpush1.bf16.msra.mxu0 %v2798_v34  ;;  %1256 = vmatpush1.bf16.msra.mxu1 %v2800_v35  ;;  %v150_v63 = vld [vmem:[#allocation5 + $0x200] sm:$0xff]  ;;  %v151_v1 = vld [vmem:[#allocation5 + $0x208] sm:$0xff] }
  0x49   :  { %1064 = vmatprep.subr.bf16.mxu0 %v2807_v36  ;;  %1257 = vmatprep.subr.bf16.mxu1 %v2809_v37  ;;  %v154_v0 = vld [vmem:[#allocation5 + $0x220] sm:$0xff]  ;;  %v155_v2 = vld [vmem:[#allocation5 + $0x228] sm:$0xff] }
  0x4a   :  { %1088 = vmatprep.mubr.bf16.mxu0 %v3375_v56  ;;  %1281 = vmatprep.mubr.bf16.mxu1 %v3375_v56  ;;  %v2839_v5 = vcombine.high %v150_v63, %v154_v0  ;;  %v2841_v6 = vcombine.high %v151_v1, %v155_v2  ;;  %v158_v7 = vld [vmem:[#allocation5 + $0x240] sm:$0xff]  ;;  %v159_v9 = vld [vmem:[#allocation5 + $0x248] sm:$0xff]  ;;  %v2838_v11 = vcombine.low %v150_v63, %v154_v0  ;;  %v88_v0 = vld [vmem:[#allocation5 + $0x10] sm:$0xff] }
  0x4b   :  { %v162_v8 = vld [vmem:[#allocation5 + $0x260] sm:$0xff]  ;;  %v163_v10 = vld [vmem:[#allocation5 + $0x268] sm:$0xff]  ;;  %v2840_v12 = vcombine.low %v151_v1, %v155_v2  ;;  %v92_v1 = vld [vmem:[#allocation5 + $0x30] sm:$0xff] }
  0x4c   :  { %1065 = vmatpush1.bf16.msra.mxu0 %v2806_v42  ;;  %1258 = vmatpush1.bf16.msra.mxu1 %v2808_v43  ;;  %v2847_v13 = vcombine.high %v158_v7, %v162_v8  ;;  %v2849_v14 = vcombine.high %v159_v9, %v163_v10  ;;  %v166_v15 = vld [vmem:[#allocation5 + $0x280] sm:$0xff]  ;;  %v167_v17 = vld [vmem:[#allocation5 + $0x288] sm:$0xff]  ;;  %v2846_v19 = vcombine.low %v158_v7, %v162_v8  ;;  %v89_v2 = vld [vmem:[#allocation5 + $0x18] sm:$0xff] }
  0x4d   :  { %1066 = vmatprep.subr.bf16.mxu0 %v2815_v44  ;;  %1259 = vmatprep.subr.bf16.mxu1 %v2817_v45  ;;  %v170_v16 = vld [vmem:[#allocation5 + $0x2a0] sm:$0xff]  ;;  %v171_v18 = vld [vmem:[#allocation5 + $0x2a8] sm:$0xff]  ;;  %v2848_v20 = vcombine.low %v159_v9, %v163_v10  ;;  %v96_v9 = vld [vmem:[#allocation5 + $0x50] sm:$0xff] }
  0x4e   :  { %v2855_v21 = vcombine.high %v166_v15, %v170_v16  ;;  %v2857_v22 = vcombine.high %v167_v17, %v171_v18  ;;  %v174_v23 = vld [vmem:[#allocation5 + $0x2c0] sm:$0xff]  ;;  %v175_v25 = vld [vmem:[#allocation5 + $0x2c8] sm:$0xff]  ;;  %v2854_v27 = vcombine.low %v166_v15, %v170_v16  ;;  %v2856_v28 = vcombine.low %v167_v17, %v171_v18  ;;  %v100_v10 = vld [vmem:[#allocation5 + $0x70] sm:$0xff] }
  0x4f   :  { %v178_v24 = vld [vmem:[#allocation5 + $0x2e0] sm:$0xff]  ;;  %v179_v26 = vld [vmem:[#allocation5 + $0x2e8] sm:$0xff]  ;;  %v3381_v15 = vld [vmem:[#allocation2 + $0x14] ss:$8 sps:$4 sm:$0xff]   ;;  %v2787_v16 = vcombine.high %v96_v9, %v100_v10 }
  0x50   :  { %1067 = vmatpush1.bf16.msra.mxu0 %v2814_v50  ;;  %1260 = vmatpush1.bf16.msra.mxu1 %v2816_v51  ;;  %v2863_v29 = vcombine.high %v174_v23, %v178_v24  ;;  %v2865_v30 = vcombine.high %v175_v25, %v179_v26  ;;  %v182_v31 = vld [vmem:[#allocation5 + $0x300] sm:$0xff]  ;;  %v183_v33 = vld [vmem:[#allocation5 + $0x308] sm:$0xff]  ;;  %v2862_v35 = vcombine.low %v174_v23, %v178_v24  ;;  %v104_v17 = vld [vmem:[#allocation5 + $0x90] sm:$0xff] }
  0x51   :  { %1068 = vmatprep.subr.bf16.mxu0 %v2823_v52  ;;  %1261 = vmatprep.subr.bf16.mxu1 %v2825_v53  ;;  %v186_v32 = vld [vmem:[#allocation5 + $0x320] sm:$0xff]  ;;  %v187_v34 = vld [vmem:[#allocation5 + $0x328] sm:$0xff]  ;;  %v2864_v36 = vcombine.low %v175_v25, %v179_v26  ;;  %v108_v18 = vld [vmem:[#allocation5 + $0xb0] sm:$0xff] }
  0x52   :  { %v2871_v37 = vcombine.high %v182_v31, %v186_v32  ;;  %v2873_v38 = vcombine.high %v183_v33, %v187_v34  ;;  %v190_v39 = vld [vmem:[#allocation5 + $0x340] sm:$0xff]  ;;  %v191_v41 = vld [vmem:[#allocation5 + $0x348] sm:$0xff]  ;;  %v2870_v43 = vcombine.low %v182_v31, %v186_v32  ;;  %v2872_v44 = vcombine.low %v183_v33, %v187_v34  ;;  %v3387_v26 = vld [vmem:[#allocation2 + $0x10] ss:$8 sps:$4 sm:$0xff]  }
  0x53   :  { %v194_v40 = vld [vmem:[#allocation5 + $0x360] sm:$0xff]  ;;  %v195_v42 = vld [vmem:[#allocation5 + $0x368] sm:$0xff]  ;;  %v2795_v24 = vcombine.high %v104_v17, %v108_v18  ;;  %v117_v31 = vld [vmem:[#allocation5 + $0xf8] sm:$0xff]  ;;  %v2794_v32 = vcombine.low %v104_v17, %v108_v18 }
  0x54   :  { %1069 = vmatpush1.bf16.msra.mxu0 %v2822_v59  ;;  %1262 = vmatpush1.bf16.msra.mxu1 %v2824_v60  ;;  %v2879_v45 = vcombine.high %v190_v39, %v194_v40  ;;  %v2881_v46 = vcombine.high %v191_v41, %v195_v42  ;;  %v198_v47 = vld [vmem:[#allocation5 + $0x380] sm:$0xff]  ;;  %v199_v49 = vld [vmem:[#allocation5 + $0x388] sm:$0xff]  ;;  %v2878_v51 = vcombine.low %v190_v39, %v194_v40  ;;  %v125_v39 = vld [vmem:[#allocation5 + $0x138] sm:$0xff] }
  0x55   :  { %1070 = vmatprep.subr.bf16.mxu0 %v2831_v61  ;;  %1263 = vmatprep.subr.bf16.mxu1 %v2833_v62  ;;  %v202_v48 = vld [vmem:[#allocation5 + $0x3a0] sm:$0xff]  ;;  %v203_v50 = vld [vmem:[#allocation5 + $0x3a8] sm:$0xff]  ;;  %v2880_v52 = vcombine.low %v191_v41, %v195_v42 }
  0x56   :  { %v2887_v53 = vcombine.high %v198_v47, %v202_v48  ;;  %v2889_v54 = vcombine.high %v199_v49, %v203_v50  ;;  %v206_v55 = vld [vmem:[#allocation5 + $0x3c0] sm:$0xff]  ;;  %v207_v58 = vld [vmem:[#allocation5 + $0x3c8] sm:$0xff]  ;;  %v2886_v60 = vcombine.low %v198_v47, %v202_v48  ;;  %v2888_v61 = vcombine.low %v199_v49, %v203_v50  ;;  %v3397_v47 = vld [vmem:[#allocation2 + $0x34] ss:$8 sps:$4 sm:$0xff]  }
  0x57   :  { %v210_v57 = vld [vmem:[#allocation5 + $0x3e0] sm:$0xff]  ;;  %v211_v59 = vld [vmem:[#allocation5 + $0x3e8] sm:$0xff]  ;;  %v129_v48 = vld [vmem:[#allocation5 + $0x158] sm:$0xff] }
  0x58   :  { %1071 = vmatpush1.bf16.msra.mxu0 %v2830_v3  ;;  %1264 = vmatpush1.bf16.msra.mxu1 %v2832_v4  ;;  %v2895_v62 = vcombine.high %v206_v55, %v210_v57  ;;  %v2897_v63 = vcombine.high %v207_v58, %v211_v59  ;;  %v93_v3 = vld [vmem:[#allocation5 + $0x38] sm:$0xff]  ;;  %v2894_v4 = vcombine.low %v206_v55, %v210_v57  ;;  %v3379_v8 = vld [vmem:[#allocation2] ss:$8 sps:$4 sm:$0xff]   ;;  %v140_v55 = vld [vmem:[#allocation5 + $0x1b0] sm:$0xff] }
  0x59   :  { %1072 = vmatprep.subr.bf16.mxu0 %v2839_v5  ;;  %1265 = vmatprep.subr.bf16.mxu1 %v2841_v6  ;;  %v2896_v5 = vcombine.low %v207_v58, %v211_v59  ;;  %v2779_v6 = vcombine.high %v88_v0, %v92_v1  ;;  %v2781_v7 = vcombine.high %v89_v2, %v93_v3  ;;  %v133_v49 = vld [vmem:[#allocation5 + $0x178] sm:$0xff]  ;;  %v3411_v18 = vld [vmem:[#allocation2 + $0x40] ss:$8 sps:$4 sm:$0xff]  }
  0x5a   :  { %v137_v57 = vld [vmem:[#allocation5 + $0x198] sm:$0xff] }
  0x5b   :  { %v141_v58 = vld [vmem:[#allocation5 + $0x1b8] sm:$0xff] }
  0x5c   :  { %1073 = vmatpush1.bf16.msra.mxu0 %v2838_v11  ;;  %1266 = vmatpush1.bf16.msra.mxu1 %v2840_v12  ;;  %v2778_v11 = vcombine.low %v88_v0, %v92_v1  ;;  %v97_v12 = vld [vmem:[#allocation5 + $0x58] sm:$0xff]  ;;  %v144_v0 = vld [vmem:[#allocation5 + $0x1d0] sm:$0xff] }
  0x5d   :  { %1074 = vmatprep.subr.bf16.mxu0 %v2847_v13  ;;  %1267 = vmatprep.subr.bf16.mxu1 %v2849_v14  ;;  %v101_v13 = vld [vmem:[#allocation5 + $0x78] sm:$0xff]  ;;  %v2780_v14 = vcombine.low %v89_v2, %v93_v3  ;;  %v148_v1 = vld [vmem:[#allocation5 + $0x1f0] sm:$0xff]  ;;  %v3405_v2 = vld [vmem:[#allocation2 + $0x44] ss:$8 sps:$4 sm:$0xff]  }
  0x5e   :  { %v2788_v23 = vcombine.low %v97_v12, %v101_v13  ;;  %v145_v3 = vld [vmem:[#allocation5 + $0x1d8] sm:$0xff] }
  0x60   :  { %1075 = vmatpush1.bf16.msra.mxu0 %v2846_v19  ;;  %1268 = vmatpush1.bf16.msra.mxu1 %v2848_v20  ;;  %v2789_v19 = vcombine.high %v97_v12, %v101_v13  ;;  %v105_v20 = vld [vmem:[#allocation5 + $0x98] sm:$0xff] }
  0x61   :  { %1076 = vmatprep.subr.bf16.mxu0 %v2855_v21  ;;  %1269 = vmatprep.subr.bf16.mxu1 %v2857_v22  ;;  %v109_v21 = vld [vmem:[#allocation5 + $0xb8] sm:$0xff]  ;;  %v2786_v22 = vcombine.low %v96_v9, %v100_v10  ;;  %v152_v10 = vld [vmem:[#allocation5 + $0x210] sm:$0xff] }
  0x62   :  { %v2797_v25 = vcombine.high %v105_v20, %v109_v21  ;;  %v2796_v33 = vcombine.low %v105_v20, %v109_v21  ;;  %v153_v12 = vld [vmem:[#allocation5 + $0x218] sm:$0xff]  ;;  %v160_v20 = vld [vmem:[#allocation5 + $0x250] sm:$0xff] }
  0x63   :  { %v157_v13 = vld [vmem:[#allocation5 + $0x238] sm:$0xff]  ;;  %v164_v21 = vld [vmem:[#allocation5 + $0x270] sm:$0xff] }
  0x64   :  { %1077 = vmatpush1.bf16.msra.mxu0 %v2854_v27  ;;  %1270 = vmatpush1.bf16.msra.mxu1 %v2856_v28  ;;  %v112_v27 = vld [vmem:[#allocation5 + $0xd0] sm:$0xff] }
  0x65   :  { %1078 = vmatprep.subr.bf16.mxu0 %v2863_v29  ;;  %1271 = vmatprep.subr.bf16.mxu1 %v2865_v30  ;;  %v116_v28 = vld [vmem:[#allocation5 + $0xf0] sm:$0xff]  ;;  %v3389_v29 = vld [vmem:[#allocation2 + $0x24] ss:$8 sps:$4 sm:$0xff]   ;;  %v113_v30 = vld [vmem:[#allocation5 + $0xd8] sm:$0xff] }
  0x66   :  { %v2803_v34 = vcombine.high %v112_v27, %v116_v28  ;;  %v2802_v40 = vcombine.low %v112_v27, %v116_v28  ;;  %v2804_v41 = vcombine.low %v113_v30, %v117_v31  ;;  %v2844_v27 = vcombine.low %v153_v12, %v157_v13 }
  0x67   :  { %v2851_v28 = vcombine.high %v160_v20, %v164_v21 }
  0x68   :  { %1079 = vmatpush1.bf16.msra.mxu0 %v2862_v35  ;;  %1272 = vmatpush1.bf16.msra.mxu1 %v2864_v36  ;;  %v2805_v35 = vcombine.high %v113_v30, %v117_v31  ;;  %v120_v36 = vld [vmem:[#allocation5 + $0x110] sm:$0xff] }
  0x69   :  { %1080 = vmatprep.subr.bf16.mxu0 %v2871_v37  ;;  %1273 = vmatprep.subr.bf16.mxu1 %v2873_v38  ;;  %v124_v37 = vld [vmem:[#allocation5 + $0x130] sm:$0xff]  ;;  %v121_v38 = vld [vmem:[#allocation5 + $0x118] sm:$0xff] }
  0x6a   :  { %v2811_v42 = vcombine.high %v120_v36, %v124_v37  ;;  %v2810_v50 = vcombine.low %v120_v36, %v124_v37  ;;  %v168_v31 = vld [vmem:[#allocation5 + $0x290] sm:$0xff] }
  0x6c   :  { %1081 = vmatpush1.bf16.msra.mxu0 %v2870_v43  ;;  %1274 = vmatpush1.bf16.msra.mxu1 %v2872_v44  ;;  %v3395_v43 = vld [vmem:[#allocation2 + $0x20] ss:$8 sps:$4 sm:$0xff]   ;;  %v2813_v44 = vcombine.high %v121_v38, %v125_v39 }
  0x6d   :  { %1082 = vmatprep.subr.bf16.mxu0 %v2879_v45  ;;  %1275 = vmatprep.subr.bf16.mxu1 %v2881_v46  ;;  %v128_v45 = vld [vmem:[#allocation5 + $0x150] sm:$0xff] }
  0x6e   :  { %v132_v46 = vld [vmem:[#allocation5 + $0x170] sm:$0xff] }
  0x6f   :  { %v2818_v59 = vcombine.low %v128_v45, %v132_v46 }
  0x70   :  { %1083 = vmatpush1.bf16.msra.mxu0 %v2878_v51  ;;  %1276 = vmatpush1.bf16.msra.mxu1 %v2880_v52  ;;  %v2812_v51 = vcombine.low %v121_v38, %v125_v39  ;;  %v2819_v52 = vcombine.high %v128_v45, %v132_v46  ;;  %v3419_v38 = vld [vmem:[#allocation2 + $0x50] ss:$8 sps:$4 sm:$0xff]  }
  0x71   :  { %1084 = vmatprep.subr.bf16.mxu0 %v2887_v53  ;;  %1277 = vmatprep.subr.bf16.mxu1 %v2889_v54  ;;  %v2821_v53 = vcombine.high %v129_v48, %v133_v49  ;;  %v136_v54 = vld [vmem:[#allocation5 + $0x190] sm:$0xff]  ;;  %v181_v45 = vld [vmem:[#allocation5 + $0x2f8] sm:$0xff] }
  0x74   :  { %1085 = vmatpush1.bf16.msra.mxu0 %v2886_v60  ;;  %1278 = vmatpush1.bf16.msra.mxu1 %v2888_v61  ;;  %v2820_v60 = vcombine.low %v129_v48, %v133_v49  ;;  %v2827_v61 = vcombine.high %v136_v54, %v140_v55 }
  0x75   :  { %1086 = vmatprep.subr.bf16.mxu0 %v2895_v62  ;;  %1279 = vmatprep.subr.bf16.mxu1 %v2897_v63  ;;  %v3403_v62 = vld [vmem:[#allocation2 + $0x30] ss:$8 sps:$4 sm:$0xff]   ;;  %v2829_v63 = vcombine.high %v137_v57, %v141_v58 }
  0x78   :  { %1087 = vmatpush1.bf16.msra.mxu0 %v2894_v4  ;;  %1280 = vmatpush1.bf16.msra.mxu1 %v2896_v5  ;;  %v149_v4 = vld [vmem:[#allocation5 + $0x1f8] sm:$0xff]  ;;  %v2826_v5 = vcombine.low %v136_v54, %v140_v55 }
  0x79   :  { %1442 = vmatprep.subr.bf16.mxu0 %v2779_v6  ;;  %1635 = vmatprep.subr.bf16.mxu1 %v2781_v7  ;;  %v2828_v6 = vcombine.low %v137_v57, %v141_v58  ;;  %v2835_v7 = vcombine.high %v144_v0, %v148_v1  ;;  %v2837_v9 = vcombine.high %v145_v3, %v149_v4  ;;  %v189_v54 = vld [vmem:[#allocation5 + $0x338] sm:$0xff] }
  0x7b   :  { %1089 = vmatmul.mubr.bf16.vlgmr.msra.gmra.mrb[0].mxu0 %v3379_v8  ;;  %1282 = vmatmul.mubr.bf16.vlgmr.msra.gmra.mrb[0].mxu1 %v3379_v8 }
  0x7c   :  { %1443 = vmatpush1.bf16.msra.mxu0 %v2778_v11  ;;  %1636 = vmatpush1.bf16.msra.mxu1 %v2780_v14  ;;  %v156_v11 = vld [vmem:[#allocation5 + $0x230] sm:$0xff]  ;;  %v2834_v14 = vcombine.low %v144_v0, %v148_v1  ;;  %v193_v1 = vld [vmem:[#allocation5 + $0x358] sm:$0xff] }
  0x7d   :  { %1098 = vmatprep.mubr.bf16.mxu0 %v3381_v15  ;;  %1291 = vmatprep.mubr.bf16.mxu1 %v3381_v15  ;;  %v2843_v17 = vcombine.high %v152_v10, %v156_v11  ;;  %v3429_v0 = vld [vmem:[#allocation2 + $0x74] ss:$8 sps:$4 sm:$0xff]  }
  0x7e   :  { %1444 = vmatprep.subr.bf16.mxu0 %v2787_v16  ;;  %1637 = vmatprep.subr.bf16.mxu1 %v2789_v19  ;;  %v2836_v16 = vcombine.low %v145_v3, %v149_v4  ;;  %v2845_v19 = vcombine.high %v153_v12, %v157_v13  ;;  %v197_v3 = vld [vmem:[#allocation5 + $0x378] sm:$0xff] }
  0x7f   :  { %v205_v12 = vld [vmem:[#allocation5 + $0x3b8] sm:$0xff] }
  0x80   :  { %1445 = vmatpush1.bf16.msra.mxu0 %v2786_v22  ;;  %1638 = vmatpush1.bf16.msra.mxu1 %v2788_v23  ;;  %v3413_v22 = vld [vmem:[#allocation2 + $0x54] ss:$8 sps:$4 sm:$0xff]  }
  0x81   :  { %1446 = vmatprep.subr.bf16.mxu0 %v2795_v24  ;;  %1639 = vmatprep.subr.bf16.mxu1 %v2797_v25  ;;  %v161_v23 = vld [vmem:[#allocation5 + $0x258] sm:$0xff]  ;;  %v2842_v25 = vcombine.low %v152_v10, %v156_v11  ;;  %v204_v10 = vld [vmem:[#allocation5 + $0x3b0] sm:$0xff] }
  0x82   :  { %v165_v24 = vld [vmem:[#allocation5 + $0x278] sm:$0xff] }
  0x83   :  { %1099 = vmatmul.mubr.bf16.gmra.mrb[4].mxu0 %v3387_v26  ;;  %1292 = vmatmul.mubr.bf16.gmra.mrb[4].mxu1 %v3387_v26  ;;  %v2853_v30 = vcombine.high %v161_v23, %v165_v24  ;;  %v2852_v36 = vcombine.low %v161_v23, %v165_v24  ;;  %v201_v11 = vld [vmem:[#allocation5 + $0x398] sm:$0xff]  ;;  %v3437_v23 = vld [vmem:[#allocation2 + $0x84] ss:$8 sps:$4 sm:$0xff]  }
  0x84   :  { %1108 = vmatprep.mubr.bf16.mxu0 %v3389_v29  ;;  %1301 = vmatprep.mubr.bf16.mxu1 %v3389_v29  ;;  %v209_v24 = vld [vmem:[#allocation5 + $0x3d8] sm:$0xff] }
  0x85   :  { %1447 = vmatpush1.bf16.msra.mxu0 %v2794_v32  ;;  %1640 = vmatpush1.bf16.msra.mxu1 %v2796_v33  ;;  %v172_v32 = vld [vmem:[#allocation5 + $0x2b0] sm:$0xff]  ;;  %v169_v33 = vld [vmem:[#allocation5 + $0x298] sm:$0xff] }
  0x86   :  { %1448 = vmatprep.subr.bf16.mxu0 %v2803_v34  ;;  %1641 = vmatprep.subr.bf16.mxu1 %v2805_v35  ;;  %v173_v34 = vld [vmem:[#allocation5 + $0x2b8] sm:$0xff]  ;;  %v2850_v35 = vcombine.low %v160_v20, %v164_v21  ;;  %v2859_v37 = vcombine.high %v168_v31, %v172_v32  ;;  %v2858_v46 = vcombine.low %v168_v31, %v172_v32  ;;  %v208_v20 = vld [vmem:[#allocation5 + $0x3d0] sm:$0xff] }
  0x87   :  { %v2861_v39 = vcombine.high %v169_v33, %v173_v34  ;;  %v2860_v48 = vcombine.low %v169_v33, %v173_v34  ;;  %v212_v21 = vld [vmem:[#allocation5 + $0x3f0] sm:$0xff]  ;;  %v3443_v34 = vld [vmem:[#allocation2 + $0x80] ss:$8 sps:$4 sm:$0xff]  }
  0x88   :  { %v2898_v32 = vcombine.low %v208_v20, %v212_v21 }
  0x89   :  { %1449 = vmatpush1.bf16.msra.mxu0 %v2802_v40  ;;  %1642 = vmatpush1.bf16.msra.mxu1 %v2804_v41  ;;  %v176_v40 = vld [vmem:[#allocation5 + $0x2d0] sm:$0xff] }
  0x8a   :  { %1450 = vmatprep.subr.bf16.mxu0 %v2811_v42  ;;  %1643 = vmatprep.subr.bf16.mxu1 %v2813_v44  ;;  %v180_v41 = vld [vmem:[#allocation5 + $0x2f0] sm:$0xff]  ;;  %v3421_v42 = vld [vmem:[#allocation2 + $0x64] ss:$8 sps:$4 sm:$0xff]   ;;  %v177_v44 = vld [vmem:[#allocation5 + $0x2d8] sm:$0xff] }
  0x8b   :  { %1109 = vmatmul.mubr.bf16.gmra.mrb[8].mxu0 %v3395_v43  ;;  %1302 = vmatmul.mubr.bf16.gmra.mrb[8].mxu1 %v3395_v43  ;;  %v2867_v49 = vcombine.high %v176_v40, %v180_v41  ;;  %v2866_v55 = vcombine.low %v176_v40, %v180_v41  ;;  %v2868_v57 = vcombine.low %v177_v44, %v181_v45  ;;  %v3461_v40 = vld [vmem:[#allocation2 + $0xb4] ss:$8 sps:$4 sm:$0xff]   ;;  %v3467_v41 = vld [vmem:[#allocation2 + $0xb0] ss:$8 sps:$4 sm:$0xff]  }
  0x8c   :  { %1118 = vmatprep.mubr.bf16.mxu0 %v3397_v47  ;;  %1311 = vmatprep.mubr.bf16.mxu1 %v3397_v47 }
  0x8d   :  { %1451 = vmatpush1.bf16.msra.mxu0 %v2810_v50  ;;  %1644 = vmatpush1.bf16.msra.mxu1 %v2812_v51  ;;  %v2869_v50 = vcombine.high %v177_v44, %v181_v45  ;;  %v184_v51 = vld [vmem:[#allocation5 + $0x310] sm:$0xff]  ;;  %v3469_v44 = vld [vmem:[#allocation2 + $0xc4] ss:$8 sps:$4 sm:$0xff]   ;;  %v3475_v45 = vld [vmem:[#allocation2 + $0xc0] ss:$8 sps:$4 sm:$0xff]  }
  0x8e   :  { %1452 = vmatprep.subr.bf16.mxu0 %v2819_v52  ;;  %1645 = vmatprep.subr.bf16.mxu1 %v2821_v53  ;;  %v188_v52 = vld [vmem:[#allocation5 + $0x330] sm:$0xff]  ;;  %v185_v53 = vld [vmem:[#allocation5 + $0x318] sm:$0xff] }
  0x8f   :  { %v2875_v58 = vcombine.high %v184_v51, %v188_v52  ;;  %v2874_v4 = vcombine.low %v184_v51, %v188_v52  ;;  %v3493_v51 = vld [vmem:[#allocation2 + $0xf4] ss:$8 sps:$4 sm:$0xff]   ;;  %v3499_v52 = vld [vmem:[#allocation2 + $0xf0] ss:$8 sps:$4 sm:$0xff]  }
  0x91   :  { %1453 = vmatpush1.bf16.msra.mxu0 %v2818_v59  ;;  %1646 = vmatpush1.bf16.msra.mxu1 %v2820_v60  ;;  %v3427_v59 = vld [vmem:[#allocation2 + $0x60] ss:$8 sps:$4 sm:$0xff]   ;;  %v2877_v60 = vcombine.high %v185_v53, %v189_v54 }
  0x92   :  { %1454 = vmatprep.subr.bf16.mxu0 %v2827_v61  ;;  %1647 = vmatprep.subr.bf16.mxu1 %v2829_v63  ;;  %v192_v61 = vld [vmem:[#allocation5 + $0x350] sm:$0xff] }
  0x93   :  { %1119 = vmatmul.mubr.bf16.gmra.mrb[12].mxu0 %v3403_v62  ;;  %1312 = vmatmul.mubr.bf16.gmra.mrb[12].mxu1 %v3403_v62  ;;  %v196_v63 = vld [vmem:[#allocation5 + $0x370] sm:$0xff] }
  0x94   :  { %1128 = vmatprep.mubr.bf16.mxu0 %v3405_v2  ;;  %1321 = vmatprep.mubr.bf16.mxu1 %v3405_v2  ;;  %v2882_v13 = vcombine.low %v192_v61, %v196_v63 }
  0x95   :  { %1455 = vmatpush1.bf16.msra.mxu0 %v2826_v5  ;;  %1648 = vmatpush1.bf16.msra.mxu1 %v2828_v6  ;;  %v2876_v5 = vcombine.low %v185_v53, %v189_v54  ;;  %v2883_v6 = vcombine.high %v192_v61, %v196_v63 }
  0x96   :  { %1456 = vmatprep.subr.bf16.mxu0 %v2835_v7  ;;  %1649 = vmatprep.subr.bf16.mxu1 %v2837_v9  ;;  %v2885_v7 = vcombine.high %v193_v1, %v197_v3  ;;  %v200_v9 = vld [vmem:[#allocation5 + $0x390] sm:$0xff] }
  0x99   :  { %1457 = vmatpush1.bf16.msra.mxu0 %v2834_v14  ;;  %1650 = vmatpush1.bf16.msra.mxu1 %v2836_v16  ;;  %v2884_v14 = vcombine.low %v193_v1, %v197_v3  ;;  %v2891_v16 = vcombine.high %v200_v9, %v204_v10 }
  0x9a   :  { %1458 = vmatprep.subr.bf16.mxu0 %v2843_v17  ;;  %1651 = vmatprep.subr.bf16.mxu1 %v2845_v19  ;;  %v3435_v17 = vld [vmem:[#allocation2 + $0x70] ss:$8 sps:$4 sm:$0xff]   ;;  %v2893_v19 = vcombine.high %v201_v11, %v205_v12 }
  0x9b   :  { %1129 = vmatmul.mubr.bf16.gmra.mrb[16].mxu0 %v3411_v18  ;;  %1322 = vmatmul.mubr.bf16.gmra.mrb[16].mxu1 %v3411_v18 }
  0x9c   :  { %1138 = vmatprep.mubr.bf16.mxu0 %v3413_v22  ;;  %1331 = vmatprep.mubr.bf16.mxu1 %v3413_v22 }
  0x9d   :  { %1459 = vmatpush1.bf16.msra.mxu0 %v2842_v25  ;;  %1652 = vmatpush1.bf16.msra.mxu1 %v2844_v27  ;;  %v213_v25 = vld [vmem:[#allocation5 + $0x3f8] sm:$0xff]  ;;  %v2890_v27 = vcombine.low %v200_v9, %v204_v10 }
  0x9e   :  { %1460 = vmatprep.subr.bf16.mxu0 %v2851_v28  ;;  %1653 = vmatprep.subr.bf16.mxu1 %v2853_v30  ;;  %v2892_v28 = vcombine.low %v201_v11, %v205_v12  ;;  %v2899_v30 = vcombine.high %v208_v20, %v212_v21  ;;  %v2901_v31 = vcombine.high %v209_v24, %v213_v25 }
  0x9f   :  { %v2900_v33 = vcombine.low %v209_v24, %v213_v25 }
  0xa1   :  { %1461 = vmatpush1.bf16.msra.mxu0 %v2850_v35  ;;  %1654 = vmatpush1.bf16.msra.mxu1 %v2852_v36  ;;  %v3445_v35 = vld [vmem:[#allocation2 + $0x94] ss:$8 sps:$4 sm:$0xff]   ;;  %v3451_v36 = vld [vmem:[#allocation2 + $0x90] ss:$8 sps:$4 sm:$0xff]  }
  0xa2   :  { %1462 = vmatprep.subr.bf16.mxu0 %v2859_v37  ;;  %1655 = vmatprep.subr.bf16.mxu1 %v2861_v39  ;;  %v3453_v37 = vld [vmem:[#allocation2 + $0xa4] ss:$8 sps:$4 sm:$0xff]   ;;  %v3459_v39 = vld [vmem:[#allocation2 + $0xa0] ss:$8 sps:$4 sm:$0xff]  }
  0xa3   :  { %1139 = vmatmul.mubr.bf16.gmra.mrb[20].mxu0 %v3419_v38  ;;  %1332 = vmatmul.mubr.bf16.gmra.mrb[20].mxu1 %v3419_v38 }
  0xa4   :  { %1148 = vmatprep.mubr.bf16.mxu0 %v3421_v42  ;;  %1341 = vmatprep.mubr.bf16.mxu1 %v3421_v42 }
  0xa5   :  { %1463 = vmatpush1.bf16.msra.mxu0 %v2858_v46  ;;  %1656 = vmatpush1.bf16.msra.mxu1 %v2860_v48  ;;  %v3477_v46 = vld [vmem:[#allocation2 + $0xd4] ss:$8 sps:$4 sm:$0xff]   ;;  %v3483_v48 = vld [vmem:[#allocation2 + $0xd0] ss:$8 sps:$4 sm:$0xff]  }
  0xa6   :  { %1464 = vmatprep.subr.bf16.mxu0 %v2867_v49  ;;  %1657 = vmatprep.subr.bf16.mxu1 %v2869_v50  ;;  %v3485_v49 = vld [vmem:[#allocation2 + $0xe4] ss:$8 sps:$4 sm:$0xff]   ;;  %v3491_v50 = vld [vmem:[#allocation2 + $0xe0] ss:$8 sps:$4 sm:$0xff]  }
  0xa9   :  { %1465 = vmatpush1.bf16.msra.mxu0 %v2866_v55  ;;  %1658 = vmatpush1.bf16.msra.mxu1 %v2868_v57 }
  0xaa   :  { %1466 = vmatprep.subr.bf16.mxu0 %v2875_v58  ;;  %1659 = vmatprep.subr.bf16.mxu1 %v2877_v60 }
  0xab   :  { %1149 = vmatmul.mubr.bf16.gmra.mrb[24].mxu0 %v3427_v59  ;;  %1342 = vmatmul.mubr.bf16.gmra.mrb[24].mxu1 %v3427_v59 }
  0xac   :  { %1158 = vmatprep.mubr.bf16.mxu0 %v3429_v0  ;;  %1351 = vmatprep.mubr.bf16.mxu1 %v3429_v0 }
  0xad   :  { %1467 = vmatpush1.bf16.msra.mxu0 %v2874_v4  ;;  %1660 = vmatpush1.bf16.msra.mxu1 %v2876_v5 }
  0xae   :  { %1468 = vmatprep.subr.bf16.mxu0 %v2883_v6  ;;  %1661 = vmatprep.subr.bf16.mxu1 %v2885_v7 }
  0xb1   :  { %1469 = vmatpush1.bf16.msra.mxu0 %v2882_v13  ;;  %1662 = vmatpush1.bf16.msra.mxu1 %v2884_v14 }
  0xb2   :  { %1470 = vmatprep.subr.bf16.mxu0 %v2891_v16  ;;  %1663 = vmatprep.subr.bf16.mxu1 %v2893_v19 }
  0xb3   :  { %1159 = vmatmul.mubr.bf16.gmra.mrb[28].mxu0 %v3435_v17  ;;  %1352 = vmatmul.mubr.bf16.gmra.mrb[28].mxu1 %v3435_v17 }
  0xb4   :  { %1168 = vmatprep.mubr.bf16.mxu0 %v3437_v23  ;;  %1361 = vmatprep.mubr.bf16.mxu1 %v3437_v23 }
  0xb5   :  { %1471 = vmatpush1.bf16.msra.mxu0 %v2890_v27  ;;  %1664 = vmatpush1.bf16.msra.mxu1 %v2892_v28 }
  0xb6   :  { %1472 = vmatprep.subr.bf16.mxu0 %v2899_v30  ;;  %1665 = vmatprep.subr.bf16.mxu1 %v2901_v31 }
  0xb9   :  { %1473 = vmatpush1.bf16.msra.mxu0 %v2898_v32  ;;  %1666 = vmatpush1.bf16.msra.mxu1 %v2900_v33 }
  0xbb   :  { %1169 = vmatmul.mubr.bf16.gmra.mrb[32].mxu0 %v3443_v34  ;;  %1362 = vmatmul.mubr.bf16.gmra.mrb[32].mxu1 %v3443_v34 }
  0xbc   :  { %1178 = vmatprep.mubr.bf16.mxu0 %v3445_v35  ;;  %1371 = vmatprep.mubr.bf16.mxu1 %v3445_v35 }
  0xc3   :  { %1179 = vmatmul.mubr.bf16.gmra.mrb[36].mxu0 %v3451_v36  ;;  %1372 = vmatmul.mubr.bf16.gmra.mrb[36].mxu1 %v3451_v36 }
  0xc4   :  { %1188 = vmatprep.mubr.bf16.mxu0 %v3453_v37  ;;  %1381 = vmatprep.mubr.bf16.mxu1 %v3453_v37 }
  0xcb   :  { %1189 = vmatmul.mubr.bf16.gmra.mrb[40].mxu0 %v3459_v39  ;;  %1382 = vmatmul.mubr.bf16.gmra.mrb[40].mxu1 %v3459_v39 }
  0xcc   :  { %1198 = vmatprep.mubr.bf16.mxu0 %v3461_v40  ;;  %1391 = vmatprep.mubr.bf16.mxu1 %v3461_v40 }
  0xd3   :  { %1199 = vmatmul.mubr.bf16.gmra.mrb[44].mxu0 %v3467_v41  ;;  %1392 = vmatmul.mubr.bf16.gmra.mrb[44].mxu1 %v3467_v41 }
  0xd4   :  { %1208 = vmatprep.mubr.bf16.mxu0 %v3469_v44  ;;  %1401 = vmatprep.mubr.bf16.mxu1 %v3469_v44 }
  0xdb   :  { %1209 = vmatmul.mubr.bf16.gmra.mrb[48].mxu0 %v3475_v45  ;;  %1402 = vmatmul.mubr.bf16.gmra.mrb[48].mxu1 %v3475_v45 }
  0xdc   :  { %1218 = vmatprep.mubr.bf16.mxu0 %v3477_v46  ;;  %1411 = vmatprep.mubr.bf16.mxu1 %v3477_v46 }
  0xe3   :  { %1219 = vmatmul.mubr.bf16.gmra.mrb[52].mxu0 %v3483_v48  ;;  %1412 = vmatmul.mubr.bf16.gmra.mrb[52].mxu1 %v3483_v48 }
  0xe4   :  { %1228 = vmatprep.mubr.bf16.mxu0 %v3485_v49  ;;  %1421 = vmatprep.mubr.bf16.mxu1 %v3485_v49 }
  0xeb   :  { %1229 = vmatmul.mubr.bf16.gmra.mrb[56].mxu0 %v3491_v50  ;;  %1422 = vmatmul.mubr.bf16.gmra.mrb[56].mxu1 %v3491_v50 }
  0xec   :  { %1238 = vmatprep.mubr.bf16.mxu0 %v3493_v51  ;;  %1431 = vmatprep.mubr.bf16.mxu1 %v3493_v51 }
  0xf3   :  { %1239 = vmatmul.mubr.bf16.gmra.mrb[60].mxu0 %v3499_v52  ;;  %1432 = vmatmul.mubr.bf16.gmra.mrb[60].mxu1 %v3499_v52 }
  0xf4   :  { %1474 = vmatprep.mubr.bf16.mxu0 %v3375_v56  ;;  %1667 = vmatprep.mubr.bf16.mxu1 %v3375_v56  ;;  %v216_v56 = vlaneseq }
  0xfb   :  { %1475 = vmatmul.mubr.bf16.vlgmr.msra.gmra.mrb[64].mxu0 %v3379_v8  ;;  %1668 = vmatmul.mubr.bf16.vlgmr.msra.gmra.mrb[64].mxu1 %v3379_v8  ;;  %v3542_v8 = vshrl.u32 %v216_v56, 7 }
  0xfc   :  { %1484 = vmatprep.mubr.bf16.mxu0 %v3381_v15  ;;  %1677 = vmatprep.mubr.bf16.mxu1 %v3381_v15 }
  0xfd   :  { %v218_v15 = vsub.s32 0, %v3542_v8 }
 0x103   :  { %1485 = vmatmul.mubr.bf16.gmra.mrb[68].mxu0 %v3387_v26  ;;  %1678 = vmatmul.mubr.bf16.gmra.mrb[68].mxu1 %v3387_v26  ;;  %v3548_v26 = vld [vmem:[#allocation7] sm:$0xff] }
 0x104   :  { %1494 = vmatprep.mubr.bf16.mxu0 %v3389_v29  ;;  %1687 = vmatprep.mubr.bf16.mxu1 %v3389_v29  ;;  %v226_v29 = vsub.s32 2, %v3542_v8 }
 0x10b   :  { %1495 = vmatmul.mubr.bf16.gmra.mrb[72].mxu0 %v3395_v43  ;;  %1688 = vmatmul.mubr.bf16.gmra.mrb[72].mxu1 %v3395_v43  ;;  %v222_v43 = vsub.s32 1, %v3542_v8 }
 0x10c   :  { %1504 = vmatprep.mubr.bf16.mxu0 %v3397_v47  ;;  %1697 = vmatprep.mubr.bf16.mxu1 %v3397_v47  ;;  %v230_v47 = vsub.s32 3, %v3542_v8 }
 0x113   :  { %1505 = vmatmul.mubr.bf16.gmra.mrb[76].mxu0 %v3403_v62  ;;  %1698 = vmatmul.mubr.bf16.gmra.mrb[76].mxu1 %v3403_v62  ;;  %v3555_v62 = vrot.slane %v3548_v26, %v218_v15 }
 0x114   :  { %1514 = vmatprep.mubr.bf16.mxu0 %v3405_v2  ;;  %1707 = vmatprep.mubr.bf16.mxu1 %v3405_v2  ;;  %v3559_v2 = vrot.slane %v3548_v26, %v226_v29 }
 0x11b   :  { %1515 = vmatmul.mubr.bf16.gmra.mrb[80].mxu0 %v3411_v18  ;;  %1708 = vmatmul.mubr.bf16.gmra.mrb[80].mxu1 %v3411_v18  ;;  %v3562_v18 = vrot.slane %v3548_v26, %v222_v43 }
 0x11c   :  { %1524 = vmatprep.mubr.bf16.mxu0 %v3413_v22  ;;  %1717 = vmatprep.mubr.bf16.mxu1 %v3413_v22  ;;  %v3566_v22 = vrot.slane %v3548_v26, %v230_v47 }
 0x123   :  { %1525 = vmatmul.mubr.bf16.gmra.mrb[84].mxu0 %v3419_v38  ;;  %1718 = vmatmul.mubr.bf16.gmra.mrb[84].mxu1 %v3419_v38 }
 0x124   :  { %1534 = vmatprep.mubr.bf16.mxu0 %v3421_v42  ;;  %1727 = vmatprep.mubr.bf16.mxu1 %v3421_v42 }
 0x12b   :  { %1535 = vmatmul.mubr.bf16.gmra.mrb[88].mxu0 %v3427_v59  ;;  %1728 = vmatmul.mubr.bf16.gmra.mrb[88].mxu1 %v3427_v59 }
 0x12c   :  { %1544 = vmatprep.mubr.bf16.mxu0 %v3429_v0  ;;  %1737 = vmatprep.mubr.bf16.mxu1 %v3429_v0 }
 0x133   :  { %1545 = vmatmul.mubr.bf16.gmra.mrb[92].mxu0 %v3435_v17  ;;  %1738 = vmatmul.mubr.bf16.gmra.mrb[92].mxu1 %v3435_v17 }
 0x134   :  { %1554 = vmatprep.mubr.bf16.mxu0 %v3437_v23  ;;  %1747 = vmatprep.mubr.bf16.mxu1 %v3437_v23 }
 0x13b   :  { %1555 = vmatmul.mubr.bf16.gmra.mrb[96].mxu0 %v3443_v34  ;;  %1748 = vmatmul.mubr.bf16.gmra.mrb[96].mxu1 %v3443_v34 }
 0x13c   :  { %1564 = vmatprep.mubr.bf16.mxu0 %v3445_v35  ;;  %1757 = vmatprep.mubr.bf16.mxu1 %v3445_v35 }
 0x143   :  { %1565 = vmatmul.mubr.bf16.gmra.mrb[100].mxu0 %v3451_v36  ;;  %1758 = vmatmul.mubr.bf16.gmra.mrb[100].mxu1 %v3451_v36 }
 0x144   :  { %1574 = vmatprep.mubr.bf16.mxu0 %v3453_v37  ;;  %1767 = vmatprep.mubr.bf16.mxu1 %v3453_v37 }
 0x14b   :  { %1575 = vmatmul.mubr.bf16.gmra.mrb[104].mxu0 %v3459_v39  ;;  %1768 = vmatmul.mubr.bf16.gmra.mrb[104].mxu1 %v3459_v39 }
 0x14c   :  { %1584 = vmatprep.mubr.bf16.mxu0 %v3461_v40  ;;  %1777 = vmatprep.mubr.bf16.mxu1 %v3461_v40 }
 0x14e   :  { %v1090_v38 = vpop.f32.mrb[0].mxu0  ;;  %v1283_v53 = vpop.f32.mrb[0].mxu1 }
 0x14f   :  { %v1091_v42 = vadd.f32 %v1090_v38, %v3555_v62  ;;  %v1092_v54 = vpop.f32.mrb[1].mxu0  ;;  %v1284_v55 = vadd.f32 %v1283_v53, %v3559_v2  ;;  %v1285_v58 = vpop.f32.mrb[1].mxu1 }
 0x150   :  { %v1093_v57 = vadd.f32 %v1092_v54, %v3562_v18  ;;  %v1094_v59 = vpop.f32.mrb[2].mxu0  ;;  %v1286_v60 = vadd.f32 %v1285_v58, %v3566_v22  ;;  %v1287_v63 = vpop.f32.mrb[2].mxu1 }
 0x151   :  { %v1095_v61 = vadd.f32 %v1094_v59, %v3555_v62  ;;  %v1096_v0 = vpop.f32.mrb[3].mxu0  ;;  %v1288_v3 = vadd.f32 %v1287_v63, %v3559_v2  ;;  %v1289_v5 = vpop.f32.mrb[3].mxu1 }
 0x152   :  { %v3030_v1 = vpack.c.bf16 %v1093_v57, %v1091_v42  ;;  %v1097_v4 = vadd.f32 %v1096_v0, %v3562_v18  ;;  %v3031_v6 = vpack.c.bf16 %v1286_v60, %v1284_v55  ;;  %v1290_v7 = vadd.f32 %v1289_v5, %v3566_v22 }
 0x153   :  { %1585 = vmatmul.mubr.bf16.gmra.mrb[108].mxu0 %v3467_v41  ;;  %1778 = vmatmul.mubr.bf16.gmra.mrb[108].mxu1 %v3467_v41 }
 0x154   :  { %2596 = vst [vmem:[#allocation8] sm:$0xff] %v3030_v1  ;;  %v3034_v9 = vpack.c.bf16 %v1097_v4, %v1095_v61  ;;  %1594 = vmatprep.mubr.bf16.mxu0 %v3469_v44  ;;  %2597 = vst [vmem:[#allocation8 + $0x8] sm:$0xff] %v3031_v6  ;;  %v3035_v10 = vpack.c.bf16 %v1290_v7, %v1288_v3  ;;  %1787 = vmatprep.mubr.bf16.mxu1 %v3469_v44 }
 0x156   :  { %2600 = vst [vmem:[#allocation8 + $0x20] sm:$0xff] %v3034_v9  ;;  %v1100_v11 = vpop.f32.mrb[4].mxu0  ;;  %2601 = vst [vmem:[#allocation8 + $0x28] sm:$0xff] %v3035_v10  ;;  %v1293_v13 = vpop.f32.mrb[4].mxu1 }
 0x157   :  { %v1101_v12 = vadd.f32 %v1100_v11, %v3555_v62  ;;  %v1102_v14 = vpop.f32.mrb[5].mxu0  ;;  %v1294_v16 = vadd.f32 %v1293_v13, %v3559_v2  ;;  %v1295_v19 = vpop.f32.mrb[5].mxu1 }
 0x158   :  { %v1103_v17 = vadd.f32 %v1102_v14, %v3562_v18  ;;  %v1104_v20 = vpop.f32.mrb[6].mxu0  ;;  %v1296_v21 = vadd.f32 %v1295_v19, %v3566_v22  ;;  %v1297_v24 = vpop.f32.mrb[6].mxu1 }
 0x159   :  { %v1105_v23 = vadd.f32 %v1104_v20, %v3555_v62  ;;  %v1106_v25 = vpop.f32.mrb[7].mxu0  ;;  %v1298_v28 = vadd.f32 %v1297_v24, %v3559_v2  ;;  %v1299_v31 = vpop.f32.mrb[7].mxu1 }
 0x15a   :  { %v3038_v27 = vpack.c.bf16 %v1103_v17, %v1101_v12  ;;  %v1107_v30 = vadd.f32 %v1106_v25, %v3562_v18  ;;  %v3039_v32 = vpack.c.bf16 %v1296_v21, %v1294_v16  ;;  %v1300_v33 = vadd.f32 %v1299_v31, %v3566_v22 }
 0x15b   :  { %1595 = vmatmul.mubr.bf16.gmra.mrb[112].mxu0 %v3475_v45  ;;  %1788 = vmatmul.mubr.bf16.gmra.mrb[112].mxu1 %v3475_v45 }
 0x15c   :  { %2604 = vst [vmem:[#allocation8 + $0x40] sm:$0xff] %v3038_v27  ;;  %v3042_v34 = vpack.c.bf16 %v1107_v30, %v1105_v23  ;;  %1604 = vmatprep.mubr.bf16.mxu0 %v3477_v46  ;;  %2605 = vst [vmem:[#allocation8 + $0x48] sm:$0xff] %v3039_v32  ;;  %v3043_v35 = vpack.c.bf16 %v1300_v33, %v1298_v28  ;;  %1797 = vmatprep.mubr.bf16.mxu1 %v3477_v46 }
 0x15e   :  { %2608 = vst [vmem:[#allocation8 + $0x60] sm:$0xff] %v3042_v34  ;;  %v1110_v36 = vpop.f32.mrb[8].mxu0  ;;  %2609 = vst [vmem:[#allocation8 + $0x68] sm:$0xff] %v3043_v35  ;;  %v1303_v39 = vpop.f32.mrb[8].mxu1 }
 0x15f   :  { %v1111_v37 = vadd.f32 %v1110_v36, %v3555_v62  ;;  %v1112_v40 = vpop.f32.mrb[9].mxu0  ;;  %v1304_v41 = vadd.f32 %v1303_v39, %v3559_v2  ;;  %v1305_v56 = vpop.f32.mrb[9].mxu1 }
 0x160   :  { %v1113_v44 = vadd.f32 %v1112_v40, %v3562_v18  ;;  %v1114_v15 = vpop.f32.mrb[10].mxu0  ;;  %v1306_v45 = vadd.f32 %v1305_v56, %v3566_v22  ;;  %v1307_v43 = vpop.f32.mrb[10].mxu1 }
 0x161   :  { %v1115_v29 = vadd.f32 %v1114_v15, %v3555_v62  ;;  %v1116_v47 = vpop.f32.mrb[11].mxu0  ;;  %v1308_v38 = vadd.f32 %v1307_v43, %v3559_v2  ;;  %v1309_v53 = vpop.f32.mrb[11].mxu1 }
 0x162   :  { %v3046_v46 = vpack.c.bf16 %v1113_v44, %v1111_v37  ;;  %v1117_v42 = vadd.f32 %v1116_v47, %v3562_v18  ;;  %v3047_v54 = vpack.c.bf16 %v1306_v45, %v1304_v41  ;;  %v1310_v55 = vadd.f32 %v1309_v53, %v3566_v22 }
 0x163   :  { %1605 = vmatmul.mubr.bf16.gmra.mrb[116].mxu0 %v3483_v48  ;;  %1798 = vmatmul.mubr.bf16.gmra.mrb[116].mxu1 %v3483_v48 }
 0x164   :  { %2612 = vst [vmem:[#allocation8 + $0x80] sm:$0xff] %v3046_v46  ;;  %v3050_v57 = vpack.c.bf16 %v1117_v42, %v1115_v29  ;;  %1614 = vmatprep.mubr.bf16.mxu0 %v3485_v49  ;;  %2613 = vst [vmem:[#allocation8 + $0x88] sm:$0xff] %v3047_v54  ;;  %v3051_v58 = vpack.c.bf16 %v1310_v55, %v1308_v38  ;;  %1807 = vmatprep.mubr.bf16.mxu1 %v3485_v49 }
 0x166   :  { %2616 = vst [vmem:[#allocation8 + $0xa0] sm:$0xff] %v3050_v57  ;;  %v1120_v59 = vpop.f32.mrb[12].mxu0  ;;  %2617 = vst [vmem:[#allocation8 + $0xa8] sm:$0xff] %v3051_v58  ;;  %v1313_v61 = vpop.f32.mrb[12].mxu1 }
 0x167   :  { %v1121_v60 = vadd.f32 %v1120_v59, %v3555_v62  ;;  %v1122_v63 = vpop.f32.mrb[13].mxu0  ;;  %v1314_v0 = vadd.f32 %v1313_v61, %v3559_v2  ;;  %v1315_v3 = vpop.f32.mrb[13].mxu1 }
 0x168   :  { %v1123_v1 = vadd.f32 %v1122_v63, %v3562_v18  ;;  %v1124_v4 = vpop.f32.mrb[14].mxu0  ;;  %v1316_v48 = vadd.f32 %v1315_v3, %v3566_v22  ;;  %v1317_v6 = vpop.f32.mrb[14].mxu1 }
 0x169   :  { %v1125_v5 = vadd.f32 %v1124_v4, %v3555_v62  ;;  %v1126_v7 = vpop.f32.mrb[15].mxu0  ;;  %v1318_v9 = vadd.f32 %v1317_v6, %v3559_v2  ;;  %v1319_v11 = vpop.f32.mrb[15].mxu1 }
 0x16a   :  { %v3054_v49 = vpack.c.bf16 %v1123_v1, %v1121_v60  ;;  %v1127_v10 = vadd.f32 %v1126_v7, %v3562_v18  ;;  %v3055_v12 = vpack.c.bf16 %v1316_v48, %v1314_v0  ;;  %v1320_v13 = vadd.f32 %v1319_v11, %v3566_v22 }
 0x16b   :  { %1615 = vmatmul.mubr.bf16.gmra.mrb[120].mxu0 %v3491_v50  ;;  %1808 = vmatmul.mubr.bf16.gmra.mrb[120].mxu1 %v3491_v50 }
 0x16c   :  { %2620 = vst [vmem:[#allocation8 + $0xc0] sm:$0xff] %v3054_v49  ;;  %v3058_v14 = vpack.c.bf16 %v1127_v10, %v1125_v5  ;;  %1624 = vmatprep.mubr.bf16.mxu0 %v3493_v51  ;;  %2621 = vst [vmem:[#allocation8 + $0xc8] sm:$0xff] %v3055_v12  ;;  %v3059_v16 = vpack.c.bf16 %v1320_v13, %v1318_v9  ;;  %1817 = vmatprep.mubr.bf16.mxu1 %v3493_v51 }
 0x16e   :  { %2624 = vst [vmem:[#allocation8 + $0xe0] sm:$0xff] %v3058_v14  ;;  %v1130_v17 = vpop.f32.mrb[16].mxu0  ;;  %2625 = vst [vmem:[#allocation8 + $0xe8] sm:$0xff] %v3059_v16  ;;  %v1323_v20 = vpop.f32.mrb[16].mxu1 }
 0x16f   :  { %v1131_v19 = vadd.f32 %v1130_v17, %v3555_v62  ;;  %v1132_v21 = vpop.f32.mrb[17].mxu0  ;;  %v1324_v23 = vadd.f32 %v1323_v20, %v3559_v2  ;;  %v1325_v25 = vpop.f32.mrb[17].mxu1 }
 0x170   :  { %v1133_v24 = vadd.f32 %v1132_v21, %v3562_v18  ;;  %v1134_v27 = vpop.f32.mrb[18].mxu0  ;;  %v1326_v50 = vadd.f32 %v1325_v25, %v3566_v22  ;;  %v1327_v30 = vpop.f32.mrb[18].mxu1 }
 0x171   :  { %v1135_v28 = vadd.f32 %v1134_v27, %v3555_v62  ;;  %v1136_v31 = vpop.f32.mrb[19].mxu0  ;;  %v1328_v32 = vadd.f32 %v1327_v30, %v3559_v2  ;;  %v1329_v34 = vpop.f32.mrb[19].mxu1 }
 0x172   :  { %v3062_v51 = vpack.c.bf16 %v1133_v24, %v1131_v19  ;;  %v1137_v33 = vadd.f32 %v1136_v31, %v3562_v18  ;;  %v3063_v35 = vpack.c.bf16 %v1326_v50, %v1324_v23  ;;  %v1330_v36 = vadd.f32 %v1329_v34, %v3566_v22 }
 0x173   :  { %1625 = vmatmul.mubr.bf16.gmra.mrb[124].mxu0 %v3499_v52  ;;  %1818 = vmatmul.mubr.bf16.gmra.mrb[124].mxu1 %v3499_v52 }
 0x174   :  { %2628 = vst [vmem:[#allocation8 + $0x100] sm:$0xff] %v3062_v51  ;;  %v3066_v37 = vpack.c.bf16 %v1137_v33, %v1135_v28  ;;  %2629 = vst [vmem:[#allocation8 + $0x108] sm:$0xff] %v3063_v35  ;;  %v3067_v39 = vpack.c.bf16 %v1330_v36, %v1328_v32 }
 0x176   :  { %2632 = vst [vmem:[#allocation8 + $0x120] sm:$0xff] %v3066_v37  ;;  %v1140_v40 = vpop.f32.mrb[20].mxu0  ;;  %2633 = vst [vmem:[#allocation8 + $0x128] sm:$0xff] %v3067_v39  ;;  %v1333_v44 = vpop.f32.mrb[20].mxu1 }
 0x177   :  { %v1141_v41 = vadd.f32 %v1140_v40, %v3555_v62  ;;  %v1142_v56 = vpop.f32.mrb[21].mxu0  ;;  %v1334_v15 = vadd.f32 %v1333_v44, %v3559_v2  ;;  %v1335_v29 = vpop.f32.mrb[21].mxu1 }
 0x178   :  { %v1143_v45 = vadd.f32 %v1142_v56, %v3562_v18  ;;  %v1144_v43 = vpop.f32.mrb[22].mxu0  ;;  %v1336_v47 = vadd.f32 %v1335_v29, %v3566_v22  ;;  %v1337_v52 = vpop.f32.mrb[22].mxu1 }
 0x179   :  { %v1145_v46 = vadd.f32 %v1144_v43, %v3555_v62  ;;  %v1146_v38 = vpop.f32.mrb[23].mxu0  ;;  %v1338_v53 = vadd.f32 %v1337_v52, %v3559_v2  ;;  %v1339_v55 = vpop.f32.mrb[23].mxu1 }
 0x17a   :  { %v3070_v42 = vpack.c.bf16 %v1143_v45, %v1141_v41  ;;  %v1147_v54 = vadd.f32 %v1146_v38, %v3562_v18  ;;  %v3071_v57 = vpack.c.bf16 %v1336_v47, %v1334_v15  ;;  %v1340_v58 = vadd.f32 %v1339_v55, %v3566_v22 }
 0x17c   :  { %2636 = vst [vmem:[#allocation8 + $0x140] sm:$0xff] %v3070_v42  ;;  %v3074_v59 = vpack.c.bf16 %v1147_v54, %v1145_v46  ;;  %2637 = vst [vmem:[#allocation8 + $0x148] sm:$0xff] %v3071_v57  ;;  %v3075_v60 = vpack.c.bf16 %v1340_v58, %v1338_v53 }
 0x17e   :  { %2640 = vst [vmem:[#allocation8 + $0x160] sm:$0xff] %v3074_v59  ;;  %v1150_v61 = vpop.f32.mrb[24].mxu0  ;;  %2641 = vst [vmem:[#allocation8 + $0x168] sm:$0xff] %v3075_v60  ;;  %v1343_v0 = vpop.f32.mrb[24].mxu1 }
 0x17f   :  { %v1151_v63 = vadd.f32 %v1150_v61, %v3555_v62  ;;  %v1152_v1 = vpop.f32.mrb[25].mxu0  ;;  %v1344_v3 = vadd.f32 %v1343_v0, %v3559_v2  ;;  %v1345_v48 = vpop.f32.mrb[25].mxu1 }
 0x180   :  { %v1153_v4 = vadd.f32 %v1152_v1, %v3562_v18  ;;  %v1154_v5 = vpop.f32.mrb[26].mxu0  ;;  %v1346_v6 = vadd.f32 %v1345_v48, %v3566_v22  ;;  %v1347_v49 = vpop.f32.mrb[26].mxu1 }
 0x181   :  { %v1155_v7 = vadd.f32 %v1154_v5, %v3555_v62  ;;  %v1156_v9 = vpop.f32.mrb[27].mxu0  ;;  %v1348_v11 = vadd.f32 %v1347_v49, %v3559_v2  ;;  %v1349_v13 = vpop.f32.mrb[27].mxu1 }
 0x182   :  { %v3078_v10 = vpack.c.bf16 %v1153_v4, %v1151_v63  ;;  %v1157_v12 = vadd.f32 %v1156_v9, %v3562_v18  ;;  %v3079_v14 = vpack.c.bf16 %v1346_v6, %v1344_v3  ;;  %v1350_v16 = vadd.f32 %v1349_v13, %v3566_v22 }
 0x184   :  { %2644 = vst [vmem:[#allocation8 + $0x180] sm:$0xff] %v3078_v10  ;;  %v3082_v17 = vpack.c.bf16 %v1157_v12, %v1155_v7  ;;  %2645 = vst [vmem:[#allocation8 + $0x188] sm:$0xff] %v3079_v14  ;;  %v3083_v19 = vpack.c.bf16 %v1350_v16, %v1348_v11 }
 0x186   :  { %2648 = vst [vmem:[#allocation8 + $0x1a0] sm:$0xff] %v3082_v17  ;;  %v1160_v20 = vpop.f32.mrb[28].mxu0  ;;  %2649 = vst [vmem:[#allocation8 + $0x1a8] sm:$0xff] %v3083_v19  ;;  %v1353_v23 = vpop.f32.mrb[28].mxu1 }
 0x187   :  { %v1161_v21 = vadd.f32 %v1160_v20, %v3555_v62  ;;  %v1162_v24 = vpop.f32.mrb[29].mxu0  ;;  %v1354_v25 = vadd.f32 %v1353_v23, %v3559_v2  ;;  %v1355_v50 = vpop.f32.mrb[29].mxu1 }
 0x188   :  { %v1163_v27 = vadd.f32 %v1162_v24, %v3562_v18  ;;  %v1164_v28 = vpop.f32.mrb[30].mxu0  ;;  %v1356_v30 = vadd.f32 %v1355_v50, %v3566_v22  ;;  %v1357_v51 = vpop.f32.mrb[30].mxu1 }
 0x189   :  { %v1165_v31 = vadd.f32 %v1164_v28, %v3555_v62  ;;  %v1166_v32 = vpop.f32.mrb[31].mxu0  ;;  %v1358_v34 = vadd.f32 %v1357_v51, %v3559_v2  ;;  %v1359_v36 = vpop.f32.mrb[31].mxu1 }
 0x18a   :  { %v3086_v33 = vpack.c.bf16 %v1163_v27, %v1161_v21  ;;  %v1167_v35 = vadd.f32 %v1166_v32, %v3562_v18  ;;  %v3087_v37 = vpack.c.bf16 %v1356_v30, %v1354_v25  ;;  %v1360_v39 = vadd.f32 %v1359_v36, %v3566_v22 }
 0x18c   :  { %2652 = vst [vmem:[#allocation8 + $0x1c0] sm:$0xff] %v3086_v33  ;;  %v3090_v40 = vpack.c.bf16 %v1167_v35, %v1165_v31  ;;  %2653 = vst [vmem:[#allocation8 + $0x1c8] sm:$0xff] %v3087_v37  ;;  %v3091_v41 = vpack.c.bf16 %v1360_v39, %v1358_v34 }
 0x18e   :  { %2656 = vst [vmem:[#allocation8 + $0x1e0] sm:$0xff] %v3090_v40  ;;  %v1170_v44 = vpop.f32.mrb[32].mxu0  ;;  %2657 = vst [vmem:[#allocation8 + $0x1e8] sm:$0xff] %v3091_v41  ;;  %v1363_v15 = vpop.f32.mrb[32].mxu1 }
 0x18f   :  { %v1171_v56 = vadd.f32 %v1170_v44, %v3555_v62  ;;  %v1172_v45 = vpop.f32.mrb[33].mxu0  ;;  %v1364_v29 = vadd.f32 %v1363_v15, %v3559_v2  ;;  %v1365_v47 = vpop.f32.mrb[33].mxu1 }
 0x190   :  { %v1173_v43 = vadd.f32 %v1172_v45, %v3562_v18  ;;  %v1174_v46 = vpop.f32.mrb[34].mxu0  ;;  %v1366_v52 = vadd.f32 %v1365_v47, %v3566_v22  ;;  %v1367_v42 = vpop.f32.mrb[34].mxu1 }
 0x191   :  { %v1175_v38 = vadd.f32 %v1174_v46, %v3555_v62  ;;  %v1176_v53 = vpop.f32.mrb[35].mxu0  ;;  %v1368_v55 = vadd.f32 %v1367_v42, %v3559_v2  ;;  %v1369_v58 = vpop.f32.mrb[35].mxu1 }
 0x192   :  { %v3094_v54 = vpack.c.bf16 %v1173_v43, %v1171_v56  ;;  %v1177_v57 = vadd.f32 %v1176_v53, %v3562_v18  ;;  %v3095_v59 = vpack.c.bf16 %v1366_v52, %v1364_v29  ;;  %v1370_v60 = vadd.f32 %v1369_v58, %v3566_v22 }
 0x194   :  { %2660 = vst [vmem:[#allocation8 + $0x200] sm:$0xff] %v3094_v54  ;;  %v3098_v61 = vpack.c.bf16 %v1177_v57, %v1175_v38  ;;  %2661 = vst [vmem:[#allocation8 + $0x208] sm:$0xff] %v3095_v59  ;;  %v3099_v63 = vpack.c.bf16 %v1370_v60, %v1368_v55 }
 0x196   :  { %2664 = vst [vmem:[#allocation8 + $0x220] sm:$0xff] %v3098_v61  ;;  %v1180_v0 = vpop.f32.mrb[36].mxu0  ;;  %2665 = vst [vmem:[#allocation8 + $0x228] sm:$0xff] %v3099_v63  ;;  %v1373_v3 = vpop.f32.mrb[36].mxu1 }
 0x197   :  { %v1181_v1 = vadd.f32 %v1180_v0, %v3555_v62  ;;  %v1182_v4 = vpop.f32.mrb[37].mxu0  ;;  %v1374_v48 = vadd.f32 %v1373_v3, %v3559_v2  ;;  %v1375_v6 = vpop.f32.mrb[37].mxu1 }
 0x198   :  { %v1183_v5 = vadd.f32 %v1182_v4, %v3562_v18  ;;  %v1184_v7 = vpop.f32.mrb[38].mxu0  ;;  %v1376_v49 = vadd.f32 %v1375_v6, %v3566_v22  ;;  %v1377_v10 = vpop.f32.mrb[38].mxu1 }
 0x199   :  { %v1185_v9 = vadd.f32 %v1184_v7, %v3555_v62  ;;  %v1186_v11 = vpop.f32.mrb[39].mxu0  ;;  %v1378_v13 = vadd.f32 %v1377_v10, %v3559_v2  ;;  %v1379_v16 = vpop.f32.mrb[39].mxu1 }
 0x19a   :  { %v3102_v12 = vpack.c.bf16 %v1183_v5, %v1181_v1  ;;  %v1187_v14 = vadd.f32 %v1186_v11, %v3562_v18  ;;  %v3103_v17 = vpack.c.bf16 %v1376_v49, %v1374_v48  ;;  %v1380_v19 = vadd.f32 %v1379_v16, %v3566_v22 }
 0x19c   :  { %2668 = vst [vmem:[#allocation8 + $0x240] sm:$0xff] %v3102_v12  ;;  %v3106_v20 = vpack.c.bf16 %v1187_v14, %v1185_v9  ;;  %2669 = vst [vmem:[#allocation8 + $0x248] sm:$0xff] %v3103_v17  ;;  %v3107_v21 = vpack.c.bf16 %v1380_v19, %v1378_v13 }
 0x19e   :  { %2672 = vst [vmem:[#allocation8 + $0x260] sm:$0xff] %v3106_v20  ;;  %v1190_v23 = vpop.f32.mrb[40].mxu0  ;;  %2673 = vst [vmem:[#allocation8 + $0x268] sm:$0xff] %v3107_v21  ;;  %v1383_v25 = vpop.f32.mrb[40].mxu1 }
 0x19f   :  { %v1191_v24 = vadd.f32 %v1190_v23, %v3555_v62  ;;  %v1192_v27 = vpop.f32.mrb[41].mxu0  ;;  %v1384_v50 = vadd.f32 %v1383_v25, %v3559_v2  ;;  %v1385_v30 = vpop.f32.mrb[41].mxu1 }
 0x1a0   :  { %v1193_v28 = vadd.f32 %v1192_v27, %v3562_v18  ;;  %v1194_v31 = vpop.f32.mrb[42].mxu0  ;;  %v1386_v51 = vadd.f32 %v1385_v30, %v3566_v22  ;;  %v1387_v33 = vpop.f32.mrb[42].mxu1 }
 0x1a1   :  { %v1195_v32 = vadd.f32 %v1194_v31, %v3555_v62  ;;  %v1196_v34 = vpop.f32.mrb[43].mxu0  ;;  %v1388_v36 = vadd.f32 %v1387_v33, %v3559_v2  ;;  %v1389_v39 = vpop.f32.mrb[43].mxu1 }
 0x1a2   :  { %v3110_v35 = vpack.c.bf16 %v1193_v28, %v1191_v24  ;;  %v1197_v37 = vadd.f32 %v1196_v34, %v3562_v18  ;;  %v3111_v40 = vpack.c.bf16 %v1386_v51, %v1384_v50  ;;  %v1390_v41 = vadd.f32 %v1389_v39, %v3566_v22 }
 0x1a4   :  { %2676 = vst [vmem:[#allocation8 + $0x280] sm:$0xff] %v3110_v35  ;;  %v3114_v44 = vpack.c.bf16 %v1197_v37, %v1195_v32  ;;  %2677 = vst [vmem:[#allocation8 + $0x288] sm:$0xff] %v3111_v40  ;;  %v3115_v56 = vpack.c.bf16 %v1390_v41, %v1388_v36 }
 0x1a6   :  { %2680 = vst [vmem:[#allocation8 + $0x2a0] sm:$0xff] %v3114_v44  ;;  %v1200_v15 = vpop.f32.mrb[44].mxu0  ;;  %2681 = vst [vmem:[#allocation8 + $0x2a8] sm:$0xff] %v3115_v56  ;;  %v1393_v29 = vpop.f32.mrb[44].mxu1 }
 0x1a7   :  { %v1201_v45 = vadd.f32 %v1200_v15, %v3555_v62  ;;  %v1202_v43 = vpop.f32.mrb[45].mxu0  ;;  %v1394_v47 = vadd.f32 %v1393_v29, %v3559_v2  ;;  %v1395_v52 = vpop.f32.mrb[45].mxu1 }
 0x1a8   :  { %v1203_v46 = vadd.f32 %v1202_v43, %v3562_v18  ;;  %v1204_v38 = vpop.f32.mrb[46].mxu0  ;;  %v1396_v42 = vadd.f32 %v1395_v52, %v3566_v22  ;;  %v1397_v54 = vpop.f32.mrb[46].mxu1 }
 0x1a9   :  { %v1205_v53 = vadd.f32 %v1204_v38, %v3555_v62  ;;  %v1206_v55 = vpop.f32.mrb[47].mxu0  ;;  %v1398_v58 = vadd.f32 %v1397_v54, %v3559_v2  ;;  %v1399_v60 = vpop.f32.mrb[47].mxu1 }
 0x1aa   :  { %v3118_v57 = vpack.c.bf16 %v1203_v46, %v1201_v45  ;;  %v1207_v59 = vadd.f32 %v1206_v55, %v3562_v18  ;;  %v3119_v61 = vpack.c.bf16 %v1396_v42, %v1394_v47  ;;  %v1400_v63 = vadd.f32 %v1399_v60, %v3566_v22 }
 0x1ac   :  { %2684 = vst [vmem:[#allocation8 + $0x2c0] sm:$0xff] %v3118_v57  ;;  %v3122_v0 = vpack.c.bf16 %v1207_v59, %v1205_v53  ;;  %2685 = vst [vmem:[#allocation8 + $0x2c8] sm:$0xff] %v3119_v61  ;;  %v3123_v1 = vpack.c.bf16 %v1400_v63, %v1398_v58 }
 0x1ae   :  { %2688 = vst [vmem:[#allocation8 + $0x2e0] sm:$0xff] %v3122_v0  ;;  %v1210_v3 = vpop.f32.mrb[48].mxu0  ;;  %2689 = vst [vmem:[#allocation8 + $0x2e8] sm:$0xff] %v3123_v1  ;;  %v1403_v48 = vpop.f32.mrb[48].mxu1 }
 0x1af   :  { %v1211_v4 = vadd.f32 %v1210_v3, %v3555_v62  ;;  %v1212_v5 = vpop.f32.mrb[49].mxu0  ;;  %v1404_v6 = vadd.f32 %v1403_v48, %v3559_v2  ;;  %v1405_v49 = vpop.f32.mrb[49].mxu1 }
 0x1b0   :  { %v1213_v7 = vadd.f32 %v1212_v5, %v3562_v18  ;;  %v1214_v9 = vpop.f32.mrb[50].mxu0  ;;  %v1406_v10 = vadd.f32 %v1405_v49, %v3566_v22  ;;  %v1407_v12 = vpop.f32.mrb[50].mxu1  ;;  %v234_v49 = vsub.s32 4, %v3542_v8 }
 0x1b1   :  { %v1215_v11 = vadd.f32 %v1214_v9, %v3555_v62  ;;  %v1216_v13 = vpop.f32.mrb[51].mxu0  ;;  %v1408_v16 = vadd.f32 %v1407_v12, %v3559_v2  ;;  %v1409_v19 = vpop.f32.mrb[51].mxu1 }
 0x1b2   :  { %v3126_v14 = vpack.c.bf16 %v1213_v7, %v1211_v4  ;;  %v1217_v17 = vadd.f32 %v1216_v13, %v3562_v18  ;;  %v3127_v20 = vpack.c.bf16 %v1406_v10, %v1404_v6  ;;  %v1410_v21 = vadd.f32 %v1409_v19, %v3566_v22 }
 0x1b3   :  { %v242_v13 = vsub.s32 6, %v3542_v8 }
 0x1b4   :  { %2692 = vst [vmem:[#allocation8 + $0x300] sm:$0xff] %v3126_v14  ;;  %v3130_v23 = vpack.c.bf16 %v1217_v17, %v1215_v11  ;;  %2693 = vst [vmem:[#allocation8 + $0x308] sm:$0xff] %v3127_v20  ;;  %v3131_v24 = vpack.c.bf16 %v1410_v21, %v1408_v16  ;;  %v238_v14 = vsub.s32 5, %v3542_v8  ;;  %v246_v21 = vsub.s32 7, %v3542_v8 }
 0x1b6   :  { %2696 = vst [vmem:[#allocation8 + $0x320] sm:$0xff] %v3130_v23  ;;  %v1220_v25 = vpop.f32.mrb[52].mxu0  ;;  %2697 = vst [vmem:[#allocation8 + $0x328] sm:$0xff] %v3131_v24  ;;  %v1413_v50 = vpop.f32.mrb[52].mxu1 }
 0x1b7   :  { %v1221_v27 = vadd.f32 %v1220_v25, %v3555_v62  ;;  %v1222_v28 = vpop.f32.mrb[53].mxu0  ;;  %v1414_v30 = vadd.f32 %v1413_v50, %v3559_v2  ;;  %v1415_v51 = vpop.f32.mrb[53].mxu1 }
 0x1b8   :  { %v1223_v31 = vadd.f32 %v1222_v28, %v3562_v18  ;;  %v1224_v32 = vpop.f32.mrb[54].mxu0  ;;  %v1416_v33 = vadd.f32 %v1415_v51, %v3566_v22  ;;  %v1417_v35 = vpop.f32.mrb[54].mxu1  ;;  %v3726_v51 = vrot.slane %v3548_v26, %v238_v14 }
 0x1b9   :  { %v1225_v34 = vadd.f32 %v1224_v32, %v3555_v62  ;;  %v1226_v36 = vpop.f32.mrb[55].mxu0  ;;  %v1418_v39 = vadd.f32 %v1417_v35, %v3559_v2  ;;  %v1419_v41 = vpop.f32.mrb[55].mxu1 }
 0x1ba   :  { %v3134_v37 = vpack.c.bf16 %v1223_v31, %v1221_v27  ;;  %v1227_v40 = vadd.f32 %v1226_v36, %v3562_v18  ;;  %v3135_v44 = vpack.c.bf16 %v1416_v33, %v1414_v30  ;;  %v1420_v56 = vadd.f32 %v1419_v41, %v3566_v22 }
 0x1bb   :  { %v3720_v30 = vrot.slane %v3548_v26, %v234_v49 }
 0x1bc   :  { %2700 = vst [vmem:[#allocation8 + $0x340] sm:$0xff] %v3134_v37  ;;  %v3138_v15 = vpack.c.bf16 %v1227_v40, %v1225_v34  ;;  %2701 = vst [vmem:[#allocation8 + $0x348] sm:$0xff] %v3135_v44  ;;  %v3139_v45 = vpack.c.bf16 %v1420_v56, %v1418_v39 }
 0x1be   :  { %2704 = vst [vmem:[#allocation8 + $0x360] sm:$0xff] %v3138_v15  ;;  %v1230_v29 = vpop.f32.mrb[56].mxu0  ;;  %2705 = vst [vmem:[#allocation8 + $0x368] sm:$0xff] %v3139_v45  ;;  %v1423_v47 = vpop.f32.mrb[56].mxu1 }
 0x1bf   :  { %v1231_v43 = vadd.f32 %v1230_v29, %v3555_v62  ;;  %v1232_v46 = vpop.f32.mrb[57].mxu0  ;;  %v1424_v52 = vadd.f32 %v1423_v47, %v3559_v2  ;;  %v1425_v42 = vpop.f32.mrb[57].mxu1 }
 0x1c0   :  { %v1233_v38 = vadd.f32 %v1232_v46, %v3562_v18  ;;  %v1234_v53 = vpop.f32.mrb[58].mxu0  ;;  %v1426_v54 = vadd.f32 %v1425_v42, %v3566_v22  ;;  %v1427_v57 = vpop.f32.mrb[58].mxu1 }
 0x1c1   :  { %v1235_v55 = vadd.f32 %v1234_v53, %v3555_v62  ;;  %v1236_v58 = vpop.f32.mrb[59].mxu0  ;;  %v1428_v60 = vadd.f32 %v1427_v57, %v3559_v2  ;;  %v1429_v63 = vpop.f32.mrb[59].mxu1 }
 0x1c2   :  { %v3142_v59 = vpack.c.bf16 %v1233_v38, %v1231_v43  ;;  %v1237_v61 = vadd.f32 %v1236_v58, %v3562_v18  ;;  %v3143_v0 = vpack.c.bf16 %v1426_v54, %v1424_v52  ;;  %v1430_v1 = vadd.f32 %v1429_v63, %v3566_v22 }
 0x1c4   :  { %2708 = vst [vmem:[#allocation8 + $0x380] sm:$0xff] %v3142_v59  ;;  %v3146_v3 = vpack.c.bf16 %v1237_v61, %v1235_v55  ;;  %2709 = vst [vmem:[#allocation8 + $0x388] sm:$0xff] %v3143_v0  ;;  %v3147_v4 = vpack.c.bf16 %v1430_v1, %v1428_v60 }
 0x1c6   :  { %2712 = vst [vmem:[#allocation8 + $0x3a0] sm:$0xff] %v3146_v3  ;;  %v1240_v48 = vpop.f32.mrb[60].mxu0  ;;  %2713 = vst [vmem:[#allocation8 + $0x3a8] sm:$0xff] %v3147_v4  ;;  %v1433_v6 = vpop.f32.mrb[60].mxu1 }
 0x1c7   :  { %v1241_v5 = vadd.f32 %v1240_v48, %v3555_v62  ;;  %v1242_v7 = vpop.f32.mrb[61].mxu0  ;;  %v1434_v9 = vadd.f32 %v1433_v6, %v3559_v2  ;;  %v1435_v11 = vpop.f32.mrb[61].mxu1 }
 0x1c8   :  { %v1243_v10 = vadd.f32 %v1242_v7, %v3562_v18  ;;  %v1244_v12 = vpop.f32.mrb[62].mxu0  ;;  %v1436_v16 = vadd.f32 %v1435_v11, %v3566_v22  ;;  %v1437_v19 = vpop.f32.mrb[62].mxu1 }
 0x1c9   :  { %v1245_v17 = vadd.f32 %v1244_v12, %v3555_v62  ;;  %v1246_v20 = vpop.f32.mrb[63].mxu0  ;;  %v1438_v24 = vadd.f32 %v1437_v19, %v3559_v2  ;;  %v1439_v27 = vpop.f32.mrb[63].mxu1  ;;  %v3723_v62 = vrot.slane %v3548_v26, %v242_v13  ;;  %v3729_v2 = vrot.slane %v3548_v26, %v246_v21 }
 0x1ca   :  { %v3150_v23 = vpack.c.bf16 %v1243_v10, %v1241_v5  ;;  %v1247_v25 = vadd.f32 %v1246_v20, %v3562_v18  ;;  %v3151_v50 = vpack.c.bf16 %v1436_v16, %v1434_v9  ;;  %v1440_v28 = vadd.f32 %v1439_v27, %v3566_v22 }
 0x1cc   :  { %2716 = vst [vmem:[#allocation8 + $0x3c0] sm:$0xff] %v3150_v23  ;;  %v3154_v31 = vpack.c.bf16 %v1247_v25, %v1245_v17  ;;  %2717 = vst [vmem:[#allocation8 + $0x3c8] sm:$0xff] %v3151_v50  ;;  %v3155_v8 = vpack.c.bf16 %v1440_v28, %v1438_v24 }
 0x1ce   :  { %2720 = vst [vmem:[#allocation8 + $0x3e0] sm:$0xff] %v3154_v31  ;;  %v1476_v18 = vpop.f32.mrb[64].mxu0  ;;  %2721 = vst [vmem:[#allocation8 + $0x3e8] sm:$0xff] %v3155_v8  ;;  %v1669_v32 = vpop.f32.mrb[64].mxu1 }
 0x1cf   :  { %v1477_v22 = vadd.f32 %v1476_v18, %v3720_v30  ;;  %v1478_v33 = vpop.f32.mrb[65].mxu0  ;;  %v1670_v34 = vadd.f32 %v1669_v32, %v3723_v62  ;;  %v1671_v36 = vpop.f32.mrb[65].mxu1 }
 0x1d0   :  { %v1479_v35 = vadd.f32 %v1478_v33, %v3726_v51  ;;  %v1480_v37 = vpop.f32.mrb[66].mxu0  ;;  %v1672_v39 = vadd.f32 %v1671_v36, %v3729_v2  ;;  %v1673_v41 = vpop.f32.mrb[66].mxu1 }
 0x1d1   :  { %v1481_v40 = vadd.f32 %v1480_v37, %v3720_v30  ;;  %v1482_v26 = vpop.f32.mrb[67].mxu0  ;;  %v1674_v56 = vadd.f32 %v1673_v41, %v3723_v62  ;;  %v1675_v45 = vpop.f32.mrb[67].mxu1 }
 0x1d2   :  { %v3032_v44 = vpack.c.bf16 %v1479_v35, %v1477_v22  ;;  %v1483_v15 = vadd.f32 %v1482_v26, %v3726_v51  ;;  %v3033_v29 = vpack.c.bf16 %v1672_v39, %v1670_v34  ;;  %v1676_v43 = vadd.f32 %v1675_v45, %v3729_v2 }
 0x1d4   :  { %2598 = vst [vmem:[#allocation8 + $0x10] sm:$0xff] %v3032_v44  ;;  %v3036_v47 = vpack.c.bf16 %v1483_v15, %v1481_v40  ;;  %2599 = vst [vmem:[#allocation8 + $0x18] sm:$0xff] %v3033_v29  ;;  %v3037_v46 = vpack.c.bf16 %v1676_v43, %v1674_v56 }
 0x1d6   :  { %2602 = vst [vmem:[#allocation8 + $0x30] sm:$0xff] %v3036_v47  ;;  %v1486_v52 = vpop.f32.mrb[68].mxu0  ;;  %2603 = vst [vmem:[#allocation8 + $0x38] sm:$0xff] %v3037_v46  ;;  %v1679_v42 = vpop.f32.mrb[68].mxu1 }
 0x1d7   :  { %v1487_v38 = vadd.f32 %v1486_v52, %v3720_v30  ;;  %v1488_v53 = vpop.f32.mrb[69].mxu0  ;;  %v1680_v54 = vadd.f32 %v1679_v42, %v3723_v62  ;;  %v1681_v57 = vpop.f32.mrb[69].mxu1 }
 0x1d8   :  { %v1489_v55 = vadd.f32 %v1488_v53, %v3726_v51  ;;  %v1490_v58 = vpop.f32.mrb[70].mxu0  ;;  %v1682_v59 = vadd.f32 %v1681_v57, %v3729_v2  ;;  %v1683_v61 = vpop.f32.mrb[70].mxu1 }
 0x1d9   :  { %v1491_v60 = vadd.f32 %v1490_v58, %v3720_v30  ;;  %v1492_v63 = vpop.f32.mrb[71].mxu0  ;;  %v1684_v1 = vadd.f32 %v1683_v61, %v3723_v62  ;;  %v1685_v4 = vpop.f32.mrb[71].mxu1 }
 0x1da   :  { %v3040_v0 = vpack.c.bf16 %v1489_v55, %v1487_v38  ;;  %v1493_v3 = vadd.f32 %v1492_v63, %v3726_v51  ;;  %v3041_v48 = vpack.c.bf16 %v1682_v59, %v1680_v54  ;;  %v1686_v5 = vadd.f32 %v1685_v4, %v3729_v2 }
 0x1dc   :  { %2606 = vst [vmem:[#allocation8 + $0x50] sm:$0xff] %v3040_v0  ;;  %v3044_v6 = vpack.c.bf16 %v1493_v3, %v1491_v60  ;;  %2607 = vst [vmem:[#allocation8 + $0x58] sm:$0xff] %v3041_v48  ;;  %v3045_v7 = vpack.c.bf16 %v1686_v5, %v1684_v1 }
 0x1de   :  { %2610 = vst [vmem:[#allocation8 + $0x70] sm:$0xff] %v3044_v6  ;;  %v1496_v49 = vpop.f32.mrb[72].mxu0  ;;  %2611 = vst [vmem:[#allocation8 + $0x78] sm:$0xff] %v3045_v7  ;;  %v1689_v10 = vpop.f32.mrb[72].mxu1 }
 0x1df   :  { %v1497_v9 = vadd.f32 %v1496_v49, %v3720_v30  ;;  %v1498_v11 = vpop.f32.mrb[73].mxu0  ;;  %v1690_v12 = vadd.f32 %v1689_v10, %v3723_v62  ;;  %v1691_v14 = vpop.f32.mrb[73].mxu1 }
 0x1e0   :  { %v1499_v13 = vadd.f32 %v1498_v11, %v3726_v51  ;;  %v1500_v16 = vpop.f32.mrb[74].mxu0  ;;  %v1692_v17 = vadd.f32 %v1691_v14, %v3729_v2  ;;  %v1693_v20 = vpop.f32.mrb[74].mxu1 }
 0x1e1   :  { %v1501_v19 = vadd.f32 %v1500_v16, %v3720_v30  ;;  %v1502_v21 = vpop.f32.mrb[75].mxu0  ;;  %v1694_v24 = vadd.f32 %v1693_v20, %v3723_v62  ;;  %v1695_v27 = vpop.f32.mrb[75].mxu1 }
 0x1e2   :  { %v3048_v23 = vpack.c.bf16 %v1499_v13, %v1497_v9  ;;  %v1503_v25 = vadd.f32 %v1502_v21, %v3726_v51  ;;  %v3049_v50 = vpack.c.bf16 %v1692_v17, %v1690_v12  ;;  %v1696_v28 = vadd.f32 %v1695_v27, %v3729_v2 }
 0x1e4   :  { %2614 = vst [vmem:[#allocation8 + $0x90] sm:$0xff] %v3048_v23  ;;  %v3052_v31 = vpack.c.bf16 %v1503_v25, %v1501_v19  ;;  %2615 = vst [vmem:[#allocation8 + $0x98] sm:$0xff] %v3049_v50  ;;  %v3053_v8 = vpack.c.bf16 %v1696_v28, %v1694_v24 }
 0x1e6   :  { %2618 = vst [vmem:[#allocation8 + $0xb0] sm:$0xff] %v3052_v31  ;;  %v1506_v18 = vpop.f32.mrb[76].mxu0  ;;  %2619 = vst [vmem:[#allocation8 + $0xb8] sm:$0xff] %v3053_v8  ;;  %v1699_v32 = vpop.f32.mrb[76].mxu1 }
 0x1e7   :  { %v1507_v22 = vadd.f32 %v1506_v18, %v3720_v30  ;;  %v1508_v33 = vpop.f32.mrb[77].mxu0  ;;  %v1700_v34 = vadd.f32 %v1699_v32, %v3723_v62  ;;  %v1701_v36 = vpop.f32.mrb[77].mxu1 }
 0x1e8   :  { %v1509_v35 = vadd.f32 %v1508_v33, %v3726_v51  ;;  %v1510_v37 = vpop.f32.mrb[78].mxu0  ;;  %v1702_v39 = vadd.f32 %v1701_v36, %v3729_v2  ;;  %v1703_v41 = vpop.f32.mrb[78].mxu1 }
 0x1e9   :  { %v1511_v40 = vadd.f32 %v1510_v37, %v3720_v30  ;;  %v1512_v26 = vpop.f32.mrb[79].mxu0  ;;  %v1704_v56 = vadd.f32 %v1703_v41, %v3723_v62  ;;  %v1705_v45 = vpop.f32.mrb[79].mxu1 }
 0x1ea   :  { %v3056_v44 = vpack.c.bf16 %v1509_v35, %v1507_v22  ;;  %v1513_v15 = vadd.f32 %v1512_v26, %v3726_v51  ;;  %v3057_v29 = vpack.c.bf16 %v1702_v39, %v1700_v34  ;;  %v1706_v43 = vadd.f32 %v1705_v45, %v3729_v2 }
 0x1ec   :  { %2622 = vst [vmem:[#allocation8 + $0xd0] sm:$0xff] %v3056_v44  ;;  %v3060_v47 = vpack.c.bf16 %v1513_v15, %v1511_v40  ;;  %2623 = vst [vmem:[#allocation8 + $0xd8] sm:$0xff] %v3057_v29  ;;  %v3061_v46 = vpack.c.bf16 %v1706_v43, %v1704_v56 }
 0x1ee   :  { %2626 = vst [vmem:[#allocation8 + $0xf0] sm:$0xff] %v3060_v47  ;;  %v1516_v52 = vpop.f32.mrb[80].mxu0  ;;  %2627 = vst [vmem:[#allocation8 + $0xf8] sm:$0xff] %v3061_v46  ;;  %v1709_v42 = vpop.f32.mrb[80].mxu1 }
 0x1ef   :  { %v1517_v38 = vadd.f32 %v1516_v52, %v3720_v30  ;;  %v1518_v53 = vpop.f32.mrb[81].mxu0  ;;  %v1710_v54 = vadd.f32 %v1709_v42, %v3723_v62  ;;  %v1711_v57 = vpop.f32.mrb[81].mxu1 }
 0x1f0   :  { %v1519_v55 = vadd.f32 %v1518_v53, %v3726_v51  ;;  %v1520_v58 = vpop.f32.mrb[82].mxu0  ;;  %v1712_v59 = vadd.f32 %v1711_v57, %v3729_v2  ;;  %v1713_v61 = vpop.f32.mrb[82].mxu1 }
 0x1f1   :  { %v1521_v60 = vadd.f32 %v1520_v58, %v3720_v30  ;;  %v1522_v63 = vpop.f32.mrb[83].mxu0  ;;  %v1714_v1 = vadd.f32 %v1713_v61, %v3723_v62  ;;  %v1715_v4 = vpop.f32.mrb[83].mxu1 }
 0x1f2   :  { %v3064_v0 = vpack.c.bf16 %v1519_v55, %v1517_v38  ;;  %v1523_v3 = vadd.f32 %v1522_v63, %v3726_v51  ;;  %v3065_v48 = vpack.c.bf16 %v1712_v59, %v1710_v54  ;;  %v1716_v5 = vadd.f32 %v1715_v4, %v3729_v2 }
 0x1f4   :  { %2630 = vst [vmem:[#allocation8 + $0x110] sm:$0xff] %v3064_v0  ;;  %v3068_v6 = vpack.c.bf16 %v1523_v3, %v1521_v60  ;;  %2631 = vst [vmem:[#allocation8 + $0x118] sm:$0xff] %v3065_v48  ;;  %v3069_v7 = vpack.c.bf16 %v1716_v5, %v1714_v1 }
 0x1f6   :  { %2634 = vst [vmem:[#allocation8 + $0x130] sm:$0xff] %v3068_v6  ;;  %v1526_v49 = vpop.f32.mrb[84].mxu0  ;;  %2635 = vst [vmem:[#allocation8 + $0x138] sm:$0xff] %v3069_v7  ;;  %v1719_v10 = vpop.f32.mrb[84].mxu1 }
 0x1f7   :  { %v1527_v9 = vadd.f32 %v1526_v49, %v3720_v30  ;;  %v1528_v11 = vpop.f32.mrb[85].mxu0  ;;  %v1720_v12 = vadd.f32 %v1719_v10, %v3723_v62  ;;  %v1721_v14 = vpop.f32.mrb[85].mxu1 }
 0x1f8   :  { %v1529_v13 = vadd.f32 %v1528_v11, %v3726_v51  ;;  %v1530_v16 = vpop.f32.mrb[86].mxu0  ;;  %v1722_v17 = vadd.f32 %v1721_v14, %v3729_v2  ;;  %v1723_v20 = vpop.f32.mrb[86].mxu1 }
 0x1f9   :  { %v1531_v19 = vadd.f32 %v1530_v16, %v3720_v30  ;;  %v1532_v21 = vpop.f32.mrb[87].mxu0  ;;  %v1724_v24 = vadd.f32 %v1723_v20, %v3723_v62  ;;  %v1725_v27 = vpop.f32.mrb[87].mxu1 }
 0x1fa   :  { %v3072_v23 = vpack.c.bf16 %v1529_v13, %v1527_v9  ;;  %v1533_v25 = vadd.f32 %v1532_v21, %v3726_v51  ;;  %v3073_v50 = vpack.c.bf16 %v1722_v17, %v1720_v12  ;;  %v1726_v28 = vadd.f32 %v1725_v27, %v3729_v2 }
 0x1fc   :  { %2638 = vst [vmem:[#allocation8 + $0x150] sm:$0xff] %v3072_v23  ;;  %v3076_v31 = vpack.c.bf16 %v1533_v25, %v1531_v19  ;;  %2639 = vst [vmem:[#allocation8 + $0x158] sm:$0xff] %v3073_v50  ;;  %v3077_v8 = vpack.c.bf16 %v1726_v28, %v1724_v24 }
 0x1fe   :  { %2642 = vst [vmem:[#allocation8 + $0x170] sm:$0xff] %v3076_v31  ;;  %v1536_v18 = vpop.f32.mrb[88].mxu0  ;;  %2643 = vst [vmem:[#allocation8 + $0x178] sm:$0xff] %v3077_v8  ;;  %v1729_v32 = vpop.f32.mrb[88].mxu1 }
 0x1ff   :  { %v1537_v22 = vadd.f32 %v1536_v18, %v3720_v30  ;;  %v1538_v33 = vpop.f32.mrb[89].mxu0  ;;  %v1730_v34 = vadd.f32 %v1729_v32, %v3723_v62  ;;  %v1731_v36 = vpop.f32.mrb[89].mxu1 }
 0x200   :  { %v1539_v35 = vadd.f32 %v1538_v33, %v3726_v51  ;;  %v1540_v37 = vpop.f32.mrb[90].mxu0  ;;  %v1732_v39 = vadd.f32 %v1731_v36, %v3729_v2  ;;  %v1733_v41 = vpop.f32.mrb[90].mxu1 }
 0x201   :  { %v1541_v40 = vadd.f32 %v1540_v37, %v3720_v30  ;;  %v1542_v26 = vpop.f32.mrb[91].mxu0  ;;  %v1734_v56 = vadd.f32 %v1733_v41, %v3723_v62  ;;  %v1735_v45 = vpop.f32.mrb[91].mxu1 }
 0x202   :  { %v3080_v44 = vpack.c.bf16 %v1539_v35, %v1537_v22  ;;  %v1543_v15 = vadd.f32 %v1542_v26, %v3726_v51  ;;  %v3081_v29 = vpack.c.bf16 %v1732_v39, %v1730_v34  ;;  %v1736_v43 = vadd.f32 %v1735_v45, %v3729_v2 }
 0x204   :  { %2646 = vst [vmem:[#allocation8 + $0x190] sm:$0xff] %v3080_v44  ;;  %v3084_v47 = vpack.c.bf16 %v1543_v15, %v1541_v40  ;;  %2647 = vst [vmem:[#allocation8 + $0x198] sm:$0xff] %v3081_v29  ;;  %v3085_v46 = vpack.c.bf16 %v1736_v43, %v1734_v56 }
 0x206   :  { %2650 = vst [vmem:[#allocation8 + $0x1b0] sm:$0xff] %v3084_v47  ;;  %v1546_v52 = vpop.f32.mrb[92].mxu0  ;;  %2651 = vst [vmem:[#allocation8 + $0x1b8] sm:$0xff] %v3085_v46  ;;  %v1739_v42 = vpop.f32.mrb[92].mxu1 }
 0x207   :  { %v1547_v38 = vadd.f32 %v1546_v52, %v3720_v30  ;;  %v1548_v53 = vpop.f32.mrb[93].mxu0  ;;  %v1740_v54 = vadd.f32 %v1739_v42, %v3723_v62  ;;  %v1741_v57 = vpop.f32.mrb[93].mxu1 }
 0x208   :  { %v1549_v55 = vadd.f32 %v1548_v53, %v3726_v51  ;;  %v1550_v58 = vpop.f32.mrb[94].mxu0  ;;  %v1742_v59 = vadd.f32 %v1741_v57, %v3729_v2  ;;  %v1743_v61 = vpop.f32.mrb[94].mxu1 }
 0x209   :  { %v1551_v60 = vadd.f32 %v1550_v58, %v3720_v30  ;;  %v1552_v63 = vpop.f32.mrb[95].mxu0  ;;  %v1744_v1 = vadd.f32 %v1743_v61, %v3723_v62  ;;  %v1745_v4 = vpop.f32.mrb[95].mxu1 }
 0x20a   :  { %v3088_v0 = vpack.c.bf16 %v1549_v55, %v1547_v38  ;;  %v1553_v3 = vadd.f32 %v1552_v63, %v3726_v51  ;;  %v3089_v48 = vpack.c.bf16 %v1742_v59, %v1740_v54  ;;  %v1746_v5 = vadd.f32 %v1745_v4, %v3729_v2 }
 0x20c   :  { %2654 = vst [vmem:[#allocation8 + $0x1d0] sm:$0xff] %v3088_v0  ;;  %v3092_v6 = vpack.c.bf16 %v1553_v3, %v1551_v60  ;;  %2655 = vst [vmem:[#allocation8 + $0x1d8] sm:$0xff] %v3089_v48  ;;  %v3093_v7 = vpack.c.bf16 %v1746_v5, %v1744_v1 }
 0x20e   :  { %2658 = vst [vmem:[#allocation8 + $0x1f0] sm:$0xff] %v3092_v6  ;;  %v1556_v49 = vpop.f32.mrb[96].mxu0  ;;  %2659 = vst [vmem:[#allocation8 + $0x1f8] sm:$0xff] %v3093_v7  ;;  %v1749_v10 = vpop.f32.mrb[96].mxu1 }
 0x20f   :  { %v1557_v9 = vadd.f32 %v1556_v49, %v3720_v30  ;;  %v1558_v11 = vpop.f32.mrb[97].mxu0  ;;  %v1750_v12 = vadd.f32 %v1749_v10, %v3723_v62  ;;  %v1751_v14 = vpop.f32.mrb[97].mxu1 }
 0x210   :  { %v1559_v13 = vadd.f32 %v1558_v11, %v3726_v51  ;;  %v1560_v16 = vpop.f32.mrb[98].mxu0  ;;  %v1752_v17 = vadd.f32 %v1751_v14, %v3729_v2  ;;  %v1753_v20 = vpop.f32.mrb[98].mxu1 }
 0x211   :  { %v1561_v19 = vadd.f32 %v1560_v16, %v3720_v30  ;;  %v1562_v21 = vpop.f32.mrb[99].mxu0  ;;  %v1754_v24 = vadd.f32 %v1753_v20, %v3723_v62  ;;  %v1755_v27 = vpop.f32.mrb[99].mxu1 }
 0x212   :  { %v3096_v23 = vpack.c.bf16 %v1559_v13, %v1557_v9  ;;  %v1563_v25 = vadd.f32 %v1562_v21, %v3726_v51  ;;  %v3097_v50 = vpack.c.bf16 %v1752_v17, %v1750_v12  ;;  %v1756_v28 = vadd.f32 %v1755_v27, %v3729_v2 }
 0x214   :  { %2662 = vst [vmem:[#allocation8 + $0x210] sm:$0xff] %v3096_v23  ;;  %v3100_v31 = vpack.c.bf16 %v1563_v25, %v1561_v19  ;;  %2663 = vst [vmem:[#allocation8 + $0x218] sm:$0xff] %v3097_v50  ;;  %v3101_v8 = vpack.c.bf16 %v1756_v28, %v1754_v24 }
 0x216   :  { %2666 = vst [vmem:[#allocation8 + $0x230] sm:$0xff] %v3100_v31  ;;  %v1566_v18 = vpop.f32.mrb[100].mxu0  ;;  %2667 = vst [vmem:[#allocation8 + $0x238] sm:$0xff] %v3101_v8  ;;  %v1759_v32 = vpop.f32.mrb[100].mxu1 }
 0x217   :  { %v1567_v22 = vadd.f32 %v1566_v18, %v3720_v30  ;;  %v1568_v33 = vpop.f32.mrb[101].mxu0  ;;  %v1760_v34 = vadd.f32 %v1759_v32, %v3723_v62  ;;  %v1761_v36 = vpop.f32.mrb[101].mxu1 }
 0x218   :  { %v1569_v35 = vadd.f32 %v1568_v33, %v3726_v51  ;;  %v1570_v37 = vpop.f32.mrb[102].mxu0  ;;  %v1762_v39 = vadd.f32 %v1761_v36, %v3729_v2  ;;  %v1763_v41 = vpop.f32.mrb[102].mxu1 }
 0x219   :  { %v1571_v40 = vadd.f32 %v1570_v37, %v3720_v30  ;;  %v1572_v26 = vpop.f32.mrb[103].mxu0  ;;  %v1764_v56 = vadd.f32 %v1763_v41, %v3723_v62  ;;  %v1765_v45 = vpop.f32.mrb[103].mxu1 }
 0x21a   :  { %v3104_v44 = vpack.c.bf16 %v1569_v35, %v1567_v22  ;;  %v1573_v15 = vadd.f32 %v1572_v26, %v3726_v51  ;;  %v3105_v29 = vpack.c.bf16 %v1762_v39, %v1760_v34  ;;  %v1766_v43 = vadd.f32 %v1765_v45, %v3729_v2 }
 0x21c   :  { %2670 = vst [vmem:[#allocation8 + $0x250] sm:$0xff] %v3104_v44  ;;  %v3108_v47 = vpack.c.bf16 %v1573_v15, %v1571_v40  ;;  %2671 = vst [vmem:[#allocation8 + $0x258] sm:$0xff] %v3105_v29  ;;  %v3109_v46 = vpack.c.bf16 %v1766_v43, %v1764_v56 }
 0x21e   :  { %2674 = vst [vmem:[#allocation8 + $0x270] sm:$0xff] %v3108_v47  ;;  %v1576_v52 = vpop.f32.mrb[104].mxu0  ;;  %2675 = vst [vmem:[#allocation8 + $0x278] sm:$0xff] %v3109_v46  ;;  %v1769_v42 = vpop.f32.mrb[104].mxu1 }
 0x21f   :  { %v1577_v38 = vadd.f32 %v1576_v52, %v3720_v30  ;;  %v1578_v53 = vpop.f32.mrb[105].mxu0  ;;  %v1770_v54 = vadd.f32 %v1769_v42, %v3723_v62  ;;  %v1771_v57 = vpop.f32.mrb[105].mxu1 }
 0x220   :  { %v1579_v55 = vadd.f32 %v1578_v53, %v3726_v51  ;;  %v1580_v58 = vpop.f32.mrb[106].mxu0  ;;  %v1772_v59 = vadd.f32 %v1771_v57, %v3729_v2  ;;  %v1773_v61 = vpop.f32.mrb[106].mxu1 }
 0x221   :  { %v1581_v60 = vadd.f32 %v1580_v58, %v3720_v30  ;;  %v1582_v63 = vpop.f32.mrb[107].mxu0  ;;  %v1774_v1 = vadd.f32 %v1773_v61, %v3723_v62  ;;  %v1775_v4 = vpop.f32.mrb[107].mxu1 }
 0x222   :  { %v3112_v0 = vpack.c.bf16 %v1579_v55, %v1577_v38  ;;  %v1583_v3 = vadd.f32 %v1582_v63, %v3726_v51  ;;  %v3113_v48 = vpack.c.bf16 %v1772_v59, %v1770_v54  ;;  %v1776_v5 = vadd.f32 %v1775_v4, %v3729_v2 }
 0x224   :  { %2678 = vst [vmem:[#allocation8 + $0x290] sm:$0xff] %v3112_v0  ;;  %v3116_v6 = vpack.c.bf16 %v1583_v3, %v1581_v60  ;;  %2679 = vst [vmem:[#allocation8 + $0x298] sm:$0xff] %v3113_v48  ;;  %v3117_v7 = vpack.c.bf16 %v1776_v5, %v1774_v1 }
 0x226   :  { %2682 = vst [vmem:[#allocation8 + $0x2b0] sm:$0xff] %v3116_v6  ;;  %v1586_v49 = vpop.f32.mrb[108].mxu0  ;;  %2683 = vst [vmem:[#allocation8 + $0x2b8] sm:$0xff] %v3117_v7  ;;  %v1779_v10 = vpop.f32.mrb[108].mxu1 }
 0x227   :  { %v1587_v9 = vadd.f32 %v1586_v49, %v3720_v30  ;;  %v1588_v11 = vpop.f32.mrb[109].mxu0  ;;  %v1780_v12 = vadd.f32 %v1779_v10, %v3723_v62  ;;  %v1781_v14 = vpop.f32.mrb[109].mxu1 }
 0x228   :  { %v1589_v13 = vadd.f32 %v1588_v11, %v3726_v51  ;;  %v1590_v16 = vpop.f32.mrb[110].mxu0  ;;  %v1782_v17 = vadd.f32 %v1781_v14, %v3729_v2  ;;  %v1783_v20 = vpop.f32.mrb[110].mxu1 }
 0x229   :  { %v1591_v19 = vadd.f32 %v1590_v16, %v3720_v30  ;;  %v1592_v21 = vpop.f32.mrb[111].mxu0  ;;  %v1784_v24 = vadd.f32 %v1783_v20, %v3723_v62  ;;  %v1785_v27 = vpop.f32.mrb[111].mxu1 }
 0x22a   :  { %v3120_v23 = vpack.c.bf16 %v1589_v13, %v1587_v9  ;;  %v1593_v25 = vadd.f32 %v1592_v21, %v3726_v51  ;;  %v3121_v50 = vpack.c.bf16 %v1782_v17, %v1780_v12  ;;  %v1786_v28 = vadd.f32 %v1785_v27, %v3729_v2 }
 0x22c   :  { %2686 = vst [vmem:[#allocation8 + $0x2d0] sm:$0xff] %v3120_v23  ;;  %v3124_v31 = vpack.c.bf16 %v1593_v25, %v1591_v19  ;;  %2687 = vst [vmem:[#allocation8 + $0x2d8] sm:$0xff] %v3121_v50  ;;  %v3125_v8 = vpack.c.bf16 %v1786_v28, %v1784_v24 }
 0x22e   :  { %2690 = vst [vmem:[#allocation8 + $0x2f0] sm:$0xff] %v3124_v31  ;;  %v1596_v18 = vpop.f32.mrb[112].mxu0  ;;  %2691 = vst [vmem:[#allocation8 + $0x2f8] sm:$0xff] %v3125_v8  ;;  %v1789_v32 = vpop.f32.mrb[112].mxu1 }
 0x22f   :  { %v1597_v22 = vadd.f32 %v1596_v18, %v3720_v30  ;;  %v1598_v33 = vpop.f32.mrb[113].mxu0  ;;  %v1790_v34 = vadd.f32 %v1789_v32, %v3723_v62  ;;  %v1791_v36 = vpop.f32.mrb[113].mxu1 }
 0x230   :  { %v1599_v35 = vadd.f32 %v1598_v33, %v3726_v51  ;;  %v1600_v37 = vpop.f32.mrb[114].mxu0  ;;  %v1792_v39 = vadd.f32 %v1791_v36, %v3729_v2  ;;  %v1793_v41 = vpop.f32.mrb[114].mxu1 }
 0x231   :  { %v1601_v40 = vadd.f32 %v1600_v37, %v3720_v30  ;;  %v1602_v26 = vpop.f32.mrb[115].mxu0  ;;  %v1794_v56 = vadd.f32 %v1793_v41, %v3723_v62  ;;  %v1795_v45 = vpop.f32.mrb[115].mxu1 }
 0x232   :  { %v3128_v44 = vpack.c.bf16 %v1599_v35, %v1597_v22  ;;  %v1603_v15 = vadd.f32 %v1602_v26, %v3726_v51  ;;  %v3129_v29 = vpack.c.bf16 %v1792_v39, %v1790_v34  ;;  %v1796_v43 = vadd.f32 %v1795_v45, %v3729_v2 }
 0x234   :  { %2694 = vst [vmem:[#allocation8 + $0x310] sm:$0xff] %v3128_v44  ;;  %v3132_v47 = vpack.c.bf16 %v1603_v15, %v1601_v40  ;;  %2695 = vst [vmem:[#allocation8 + $0x318] sm:$0xff] %v3129_v29  ;;  %v3133_v46 = vpack.c.bf16 %v1796_v43, %v1794_v56 }
 0x236   :  { %2698 = vst [vmem:[#allocation8 + $0x330] sm:$0xff] %v3132_v47  ;;  %v1606_v52 = vpop.f32.mrb[116].mxu0  ;;  %2699 = vst [vmem:[#allocation8 + $0x338] sm:$0xff] %v3133_v46  ;;  %v1799_v42 = vpop.f32.mrb[116].mxu1 }
 0x237   :  { %v1607_v38 = vadd.f32 %v1606_v52, %v3720_v30  ;;  %v1608_v53 = vpop.f32.mrb[117].mxu0  ;;  %v1800_v54 = vadd.f32 %v1799_v42, %v3723_v62  ;;  %v1801_v57 = vpop.f32.mrb[117].mxu1 }
 0x238   :  { %v1609_v55 = vadd.f32 %v1608_v53, %v3726_v51  ;;  %v1610_v58 = vpop.f32.mrb[118].mxu0  ;;  %v1802_v59 = vadd.f32 %v1801_v57, %v3729_v2  ;;  %v1803_v61 = vpop.f32.mrb[118].mxu1 }
 0x239   :  { %v1611_v60 = vadd.f32 %v1610_v58, %v3720_v30  ;;  %v1612_v63 = vpop.f32.mrb[119].mxu0  ;;  %v1804_v1 = vadd.f32 %v1803_v61, %v3723_v62  ;;  %v1805_v4 = vpop.f32.mrb[119].mxu1 }
 0x23a   :  { %v3136_v0 = vpack.c.bf16 %v1609_v55, %v1607_v38  ;;  %v1613_v3 = vadd.f32 %v1612_v63, %v3726_v51  ;;  %v3137_v48 = vpack.c.bf16 %v1802_v59, %v1800_v54  ;;  %v1806_v5 = vadd.f32 %v1805_v4, %v3729_v2 }
 0x23c   :  { %2702 = vst [vmem:[#allocation8 + $0x350] sm:$0xff] %v3136_v0  ;;  %v3140_v6 = vpack.c.bf16 %v1613_v3, %v1611_v60  ;;  %2703 = vst [vmem:[#allocation8 + $0x358] sm:$0xff] %v3137_v48  ;;  %v3141_v7 = vpack.c.bf16 %v1806_v5, %v1804_v1 }
 0x23e   :  { %2706 = vst [vmem:[#allocation8 + $0x370] sm:$0xff] %v3140_v6  ;;  %v1616_v49 = vpop.f32.mrb[120].mxu0  ;;  %2707 = vst [vmem:[#allocation8 + $0x378] sm:$0xff] %v3141_v7  ;;  %v1809_v10 = vpop.f32.mrb[120].mxu1 }
 0x23f   :  { %v1617_v9 = vadd.f32 %v1616_v49, %v3720_v30  ;;  %v1618_v11 = vpop.f32.mrb[121].mxu0  ;;  %v1810_v12 = vadd.f32 %v1809_v10, %v3723_v62  ;;  %v1811_v14 = vpop.f32.mrb[121].mxu1 }
 0x240   :  { %v1619_v13 = vadd.f32 %v1618_v11, %v3726_v51  ;;  %v1620_v16 = vpop.f32.mrb[122].mxu0  ;;  %v1812_v17 = vadd.f32 %v1811_v14, %v3729_v2  ;;  %v1813_v20 = vpop.f32.mrb[122].mxu1 }
 0x241   :  { %v1621_v19 = vadd.f32 %v1620_v16, %v3720_v30  ;;  %v1622_v21 = vpop.f32.mrb[123].mxu0  ;;  %v1814_v24 = vadd.f32 %v1813_v20, %v3723_v62  ;;  %v1815_v27 = vpop.f32.mrb[123].mxu1 }
 0x242   :  { %v3144_v23 = vpack.c.bf16 %v1619_v13, %v1617_v9  ;;  %v1623_v25 = vadd.f32 %v1622_v21, %v3726_v51  ;;  %v3145_v50 = vpack.c.bf16 %v1812_v17, %v1810_v12  ;;  %v1816_v28 = vadd.f32 %v1815_v27, %v3729_v2 }
 0x244   :  { %2710 = vst [vmem:[#allocation8 + $0x390] sm:$0xff] %v3144_v23  ;;  %v3148_v31 = vpack.c.bf16 %v1623_v25, %v1621_v19  ;;  %2711 = vst [vmem:[#allocation8 + $0x398] sm:$0xff] %v3145_v50  ;;  %v3149_v8 = vpack.c.bf16 %v1816_v28, %v1814_v24 }
 0x246   :  { %2714 = vst [vmem:[#allocation8 + $0x3b0] sm:$0xff] %v3148_v31  ;;  %v1626_v18 = vpop.f32.mrb[124].mxu0  ;;  %2715 = vst [vmem:[#allocation8 + $0x3b8] sm:$0xff] %v3149_v8  ;;  %v1819_v32 = vpop.f32.mrb[124].mxu1 }
 0x247   :  { %v1627_v22 = vadd.f32 %v1626_v18, %v3720_v30  ;;  %v1628_v33 = vpop.f32.mrb[125].mxu0  ;;  %v1820_v34 = vadd.f32 %v1819_v32, %v3723_v62  ;;  %v1821_v36 = vpop.f32.mrb[125].mxu1 }
 0x248   :  { %v1629_v35 = vadd.f32 %v1628_v33, %v3726_v51  ;;  %v1630_v37 = vpop.f32.mrb[126].mxu0  ;;  %v1822_v39 = vadd.f32 %v1821_v36, %v3729_v2  ;;  %v1823_v41 = vpop.f32.mrb[126].mxu1 }
 0x249   :  { %v1631_v40 = vadd.f32 %v1630_v37, %v3720_v30  ;;  %v1632_v26 = vpop.f32.mrb[127].mxu0  ;;  %v1824_v56 = vadd.f32 %v1823_v41, %v3723_v62  ;;  %v1825_v45 = vpop.f32.mrb[127].mxu1 }
 0x24a   :  { %v3152_v44 = vpack.c.bf16 %v1629_v35, %v1627_v22  ;;  %v1633_v15 = vadd.f32 %v1632_v26, %v3726_v51  ;;  %v3153_v29 = vpack.c.bf16 %v1822_v39, %v1820_v34  ;;  %v1826_v43 = vadd.f32 %v1825_v45, %v3729_v2 }
 0x24c   :  { %2718 = vst [vmem:[#allocation8 + $0x3d0] sm:$0xff] %v3152_v44  ;;  %v3156_v47 = vpack.c.bf16 %v1633_v15, %v1631_v40  ;;  %2719 = vst [vmem:[#allocation8 + $0x3d8] sm:$0xff] %v3153_v29  ;;  %v3157_v46 = vpack.c.bf16 %v1826_v43, %v1824_v56 }
 0x24e   :  { %2722 = vst [vmem:[#allocation8 + $0x3f0] sm:$0xff] %v3156_v47  ;;  %2723 = vst [vmem:[#allocation8 + $0x3f8] sm:$0xff] %v3157_v46 }
 0x24f   :  { %3291 = shalt.err (!%p3288_p0)
}
 0x250   :  { %s3292_s29 = scalar_lea.hbm %s3877_s3, 16384 }
 0x251   :  { %p3293_p1 = scmp.ne.s32.totalorder %s3877_s3, %s3292_s29  ;;  %p3296_p2 = scmp.lt.u32.totalorder %s3292_s29, %s3877_s3 }
 0x253   :  { %p3298_p3 = pnand %p3296_p2, %p3293_p1 }
 0x255   :  { %3301 = shalt.err (!%p3298_p3)
}
 0x256   :  { %2735 = dma.vmem_to_hbm [thread:$0]  %s2730_s25, 16384, %s3877_s3, [#allocation4], %s3309_s22, %s3309_s22, %s3310_s23  }
 0x257   :  { %3306 = dma.done.wait [#allocation4], 16384  }
 0x258   :  { %3307 = vsyncadd [#allocation4], 4294950912 }
 0x259   :  { %2739 = vsyncpa [#allocation3], 1 }
 0x25a   :  { %2740 = vsyncpa [#allocation6], 1 }
 0x25b   :  { %2741 = vsyncpa [#allocation4], 1 }

</bundles_post_ra>
